<compile_context>
chip_gen: v6e
topology: v6e:2x2x1
jax: 0.10.0
libtpu: 0.0.40
codegen_flags: <defaults>
</compile_context>

<pallas_src>
import jax
import jax.numpy as jnp
from jax import lax
from jax.experimental import pallas as pl
from jax.experimental.pallas import tpu as pltpu


# ---------------------------------------------------------------------------
# Fused Pallas kernel
# ---------------------------------------------------------------------------
def make_fused_lstm_kernel(T, B, H, num_layers, matmul_dtype):
    """Ref order:
        x        (T*B, D)   time-major flattened input (rows t*B..t*B+B-1 = timestep t)
        w_ih0    (D, 4H)    layer-0 input->gates weights (pre-transposed, matmul dtype)
        w_hh0    (H, 4H)    layer-0 hidden->gates weights
        b0       (1, 4H)    layer-0 combined bias (b_ih + b_hh), f32
        [w_cat_l (2H, 4H), b_l (1, 4H)] * (num_layers-1)   fused [W_ih; W_hh] per upper layer
        fc_w     (1, H)     FC weight row, f32
        fc_b     (1, 1)     FC bias, f32
        out      (B, 1)     sigmoid(FC(last hidden))
        gx_scr   (T*B, 4H)  VMEM scratch: hoisted layer-0 input projection
    """
    n_rest = 2 * (num_layers - 1)

    def kernel(*refs):
        x_ref, wih0_ref, whh0_ref, b0_ref = refs[0], refs[1], refs[2], refs[3]
        rest_refs = refs[4:4 + n_rest]
        fcw_ref = refs[4 + n_rest]
        fcb_ref = refs[5 + n_rest]
        o_ref = refs[6 + n_rest]
        gx_scr = refs[7 + n_rest]

        # Lane mask selecting the 'g' gate block [2H, 3H): tanh there, sigmoid elsewhere.
        # Hoisted out of the time loop (JAX does not CSE broadcasts across iterations).
        lane = lax.broadcasted_iota(jnp.int32, (B, 4 * H), 1)
        g_mask = (lane >= 2 * H) & (lane < 3 * H)

        # Loop-invariant weight/bias reads, hoisted out of the recurrence.
        whh0 = whh0_ref[...]                                                  # (H, 4H)
        wcat = [rest_refs[2 * i][...] for i in range(num_layers - 1)]         # (2H, 4H)
        brest = [rest_refs[2 * i + 1][...] for i in range(num_layers - 1)]    # (1, 4H)

        # Hoisted layer-0 input projection: ONE batched MXU matmul over all T timesteps,
        # bias folded in so it also leaves the serial loop.
        gx_scr[...] = jnp.dot(x_ref[...], wih0_ref[...],
                              preferred_element_type=jnp.float32) + b0_ref[...]

        def lstm_step(gates, c):
            # One tanh pass for all four gates: sigmoid(x) = 0.5*(1 + tanh(x/2)).
            pre = jnp.where(g_mask, gates, 0.5 * gates)
            th = jnp.tanh(pre)
            act = jnp.where(g_mask, th, 0.5 * (th + 1.0))
            i_g = act[:, 0 * H:1 * H]
            f_g = act[:, 1 * H:2 * H]
            g_g = act[:, 2 * H:3 * H]
            o_g = act[:, 3 * H:4 * H]
            c_new = f_g * c + i_g * g_g
            h_new = o_g * jnp.tanh(c_new)
            return h_new, c_new

        zero = jnp.zeros((B, H), jnp.float32)
        h = [zero] * num_layers
        c = [zero] * num_layers
        y_prev = [zero] * num_layers   # y_prev[l]: layer-l output consumed by layer l+1

        # Wavefront: iteration s runs layer l at timestep t = s - l.  Each layer's step only
        # depends on state from the PREVIOUS iteration, so the per-iteration matmuls are
        # independent and overlap on the MXU.  Fully unrolled (T, L static).
        for s in range(T + num_layers - 1):
            new_y = list(y_prev)
            for l in range(num_layers):
                t = s - l
                if 0 <= t < T:
                    if l == 0:
                        gates = gx_scr[pl.ds(t * B, B), :] + jnp.dot(
                            h[0].astype(matmul_dtype), whh0,
                            preferred_element_type=jnp.float32)
                    else:
                        # Fused input+recurrent projection: [y_{l-1,t}, h_l] @ [W_ih; W_hh].
                        lhs = jnp.concatenate([y_prev[l - 1], h[l]], axis=-1)
                        gates = jnp.dot(lhs.astype(matmul_dtype), wcat[l - 1],
                                        preferred_element_type=jnp.float32) + brest[l - 1]
                    h[l], c[l] = lstm_step(gates, c[l])
                    new_y[l] = h[l]
            y_prev = new_y

        # FC(H -> 1) + sigmoid as a VPU lane reduction (avoids an N=1 MXU matmul).
        logits = jnp.sum(h[num_layers - 1] * fcw_ref[...], axis=-1,
                         keepdims=True) + fcb_ref[...]
        o_ref[...] = jax.nn.sigmoid(logits)

    return kernel


# ---------------------------------------------------------------------------
# Param preparation (ONCE, outside the jitted forward)
# ---------------------------------------------------------------------------
def prepare_params(params, matmul_dtype=jnp.bfloat16):
    layers = params["lstm_layers"]
    w_ih0, w_hh0, b_ih0, b_hh0 = layers[0]
    H = w_hh0.shape[1]
    prep = {
        "w_ih0": jnp.transpose(w_ih0).astype(matmul_dtype),                  # (D, 4H)
        "w_hh0": jnp.transpose(w_hh0).astype(matmul_dtype),                  # (H, 4H)
        "b0": (b_ih0 + b_hh0).reshape(1, 4 * H).astype(jnp.float32),
        "w_cat": [],
        "b_rest": [],
        "fc_w": params["fc_w"].reshape(1, H).astype(jnp.float32),
        "fc_b": params["fc_b"].reshape(1, 1).astype(jnp.float32),
    }
    for (w_ih, w_hh, b_ih, b_hh) in layers[1:]:
        prep["w_cat"].append(jnp.concatenate(
            [jnp.transpose(w_ih), jnp.transpose(w_hh)], axis=0).astype(matmul_dtype))
        prep["b_rest"].append((b_ih + b_hh).reshape(1, 4 * H).astype(jnp.float32))
    return prep


# ---------------------------------------------------------------------------
# Wrappers (layout + pallas_call plumbing)
# ---------------------------------------------------------------------------
def fused_lstm_head(x_flat, T, B, prep):
    """x_flat: (T*B, D) time-major flattened input, B a multiple of 8. Returns (B, 1)."""
    matmul_dtype = prep["w_ih0"].dtype
    D = prep["w_ih0"].shape[0]
    H = prep["w_hh0"].shape[0]
    num_layers = 1 + len(prep["w_cat"])

    args = [x_flat.astype(matmul_dtype), prep["w_ih0"], prep["w_hh0"], prep["b0"]]
    in_specs = [
        pl.BlockSpec((T * B, D), lambda i: (0, 0)),
        pl.BlockSpec((D, 4 * H), lambda i: (0, 0)),
        pl.BlockSpec((H, 4 * H), lambda i: (0, 0)),
        pl.BlockSpec((1, 4 * H), lambda i: (0, 0)),
    ]
    for wc, bc in zip(prep["w_cat"], prep["b_rest"]):
        args += [wc, bc]
        in_specs += [pl.BlockSpec((2 * H, 4 * H), lambda i: (0, 0)),
                     pl.BlockSpec((1, 4 * H), lambda i: (0, 0))]
    args += [prep["fc_w"], prep["fc_b"]]
    in_specs += [pl.BlockSpec((1, H), lambda i: (0, 0)),
                 pl.BlockSpec((1, 1), lambda i: (0, 0))]

    kernel = make_fused_lstm_kernel(T, B, H, num_layers, matmul_dtype)

    return pl.pallas_call(
        kernel,
        out_shape=jax.ShapeDtypeStruct((B, 1), jnp.float32),
        grid=(1,),
        in_specs=in_specs,
        out_specs=pl.BlockSpec((B, 1), lambda i: (0, 0)),
        scratch_shapes=[
            # TODO(synk): at production T*B this hoisted projection must be tiled over time
            # chunks (double-buffered) to stay inside v7x's 64 MiB VMEM; at toy sizes it is
            # a few KiB and a single matmul is fastest.
            pltpu.VMEM((T * B, 4 * H), jnp.float32),
        ],
        compiler_params=pltpu.CompilerParams(
            dimension_semantics=("arbitrary",),
            vmem_limit_bytes=32 * 1024 * 1024,  # fits default scoped limit on all gens
        ),
    )(*args)


def lstm_model_forward(x_btd, prep):
    """Forward pass matching LSTMModel.forward.

    x_btd: (B, T, D) float32 (batch_first, like PyTorch). Returns probs of shape (B,).
    """
    B, T, D = x_btd.shape
    B_pad = ((B + 7) // 8) * 8                       # fill sublanes (pad rows are inert)
    x_pad = jnp.pad(x_btd, ((0, B_pad - B), (0, 0), (0, 0)))
    # batch_first -> time-major flattened: rows [t*B_pad, (t+1)*B_pad) hold timestep t.
    x_flat = jnp.transpose(x_pad, (1, 0, 2)).reshape(T * B_pad, D)
    probs = fused_lstm_head(x_flat, T, B_pad, prep)  # (B_pad, 1)
    return jnp.squeeze(probs[:B, :])                 # PyTorch .squeeze()


# ---------------------------------------------------------------------------
# Deterministic parameter init (PyTorch-style uniform(-1/sqrt(H), 1/sqrt(H)))
# ---------------------------------------------------------------------------
def init_params(key, input_dim, hidden_dim, num_layers):
    bound = 1.0 / jnp.sqrt(jnp.float32(hidden_dim))
    layers = []
    for l in range(num_layers):
        in_d = input_dim if l == 0 else hidden_dim
        key, k1, k2, k3, k4 = jax.random.split(key, 5)
        w_ih = jax.random.uniform(k1, (4 * hidden_dim, in_d), jnp.float32, -bound, bound)
        w_hh = jax.random.uniform(k2, (4 * hidden_dim, hidden_dim), jnp.float32, -bound, bound)
        b_ih = jax.random.uniform(k3, (4 * hidden_dim,), jnp.float32, -bound, bound)
        b_hh = jax.random.uniform(k4, (4 * hidden_dim,), jnp.float32, -bound, bound)
        layers.append((w_ih, w_hh, b_ih, b_hh))
    key, k5, k6 = jax.random.split(key, 3)
    fc_w = jax.random.uniform(k5, (1, hidden_dim), jnp.float32, -bound, bound)
    fc_b = jax.random.uniform(k6, (1,), jnp.float32, -bound, bound)
    return {"lstm_layers": layers, "fc_w": fc_w, "fc_b": fc_b}


# ---------------------------------------------------------------------------
# Pure-JAX reference (correctness check)
# ---------------------------------------------------------------------------
def reference_forward(x_btd, params):
    B, T, D = x_btd.shape
    h_in = x_btd
    for (w_ih, w_hh, b_ih, b_hh) in params["lstm_layers"]:
        H = w_hh.shape[1]
        h = jnp.zeros((B, H), jnp.float32)
        c = jnp.zeros((B, H), jnp.float32)
        outs = []
        for t in range(T):
            gates = h_in[:, t, :] @ w_ih.T + h @ w_hh.T + b_ih + b_hh
            i_g = jax.nn.sigmoid(gates[:, 0 * H:1 * H])
            f_g = jax.nn.sigmoid(gates[:, 1 * H:2 * H])
            g_g = jnp.tanh(gates[:, 2 * H:3 * H])
            o_g = jax.nn.sigmoid(gates[:, 3 * H:4 * H])
            c = f_g * c + i_g * g_g
            h = o_g * jnp.tanh(c)
            outs.append(h)
        h_in = jnp.stack(outs, axis=1)
    last_hidden = h_in[:, -1, :]
    logits = last_hidden @ params["fc_w"].T + params["fc_b"]
    return jnp.squeeze(jax.nn.sigmoid(logits))


# ---------------------------------------------------------------------------
# Main
# ---------------------------------------------------------------------------
if __name__ == "__main__":
    B, T, D, H, L = 4, 8, 16, 32, 2   # batch, seq, input_dim, hidden_dim, num_layers

    key = jax.random.PRNGKey(0)
    key, kx, kp = jax.random.split(key, 3)
    x = jax.random.normal(kx, (B, T, D), dtype=jnp.float32)
    params = init_params(kp, D, H, L)

    # TODO(synk): inter-layer dropout (train-time only; dropout=0.0 default) not implemented.
    ref = jax.block_until_ready(reference_forward(x, params))
    fwd = jax.jit(lstm_model_forward)

    # f32-matmul path: exact-math validation of the fused kernel.
    prep_f32 = prepare_params(params, jnp.float32)
    out_f32 = jax.block_until_ready(fwd(x, prep_f32))
    assert out_f32.shape == (B,), out_f32.shape
    assert jnp.allclose(out_f32, ref, rtol=1e-4, atol=1e-4), (out_f32, ref)

    # bf16-matmul path (default / fast): f32 accumulation, looser tolerance vs f32 reference.
    prep_bf16 = prepare_params(params, jnp.bfloat16)
    out_bf16 = jax.block_until_ready(fwd(x, prep_bf16))
    assert out_bf16.shape == (B,), out_bf16.shape
    assert jnp.allclose(out_bf16, ref, rtol=3e-2, atol=3e-2), (out_bf16, ref)

    print("KERNEL_OK")
</pallas_src>

<mosaic_0001>
module attributes {stable_mosaic.version = 11 : i64} {
  func.func @kernel(%arg0: i32, %arg1: memref<64x16xf32, #tpu.memory_space<vmem>>, %arg2: memref<16x128xf32, #tpu.memory_space<vmem>>, %arg3: memref<32x128xf32, #tpu.memory_space<vmem>>, %arg4: memref<1x128xf32, #tpu.memory_space<vmem>>, %arg5: memref<64x128xf32, #tpu.memory_space<vmem>>, %arg6: memref<1x128xf32, #tpu.memory_space<vmem>>, %arg7: memref<1x32xf32, #tpu.memory_space<vmem>>, %arg8: memref<1x1xf32, #tpu.memory_space<vmem>>, %arg9: memref<8x1xf32, #tpu.memory_space<vmem>>, %arg10: memref<64x128xf32, #tpu.memory_space<vmem>>) attributes {dimension_semantics = [#tpu.dimension_semantics<arbitrary>], iteration_bounds = array<i64: 1>, scalar_prefetch = 0 : i64, scratch_operands = 1 : i64, tpu.core_type = #tpu.core_type<tc>, window_params = [{pipeline_mode = #tpu.pipeline_mode<synchronous>, transform_indices = @transform_0, window_bounds = array<i64: 64, 16>}, {pipeline_mode = #tpu.pipeline_mode<synchronous>, transform_indices = @transform_1, window_bounds = array<i64: 16, 128>}, {pipeline_mode = #tpu.pipeline_mode<synchronous>, transform_indices = @transform_2, window_bounds = array<i64: 32, 128>}, {pipeline_mode = #tpu.pipeline_mode<synchronous>, transform_indices = @transform_3, window_bounds = array<i64: 1, 128>}, {pipeline_mode = #tpu.pipeline_mode<synchronous>, transform_indices = @transform_4, window_bounds = array<i64: 64, 128>}, {pipeline_mode = #tpu.pipeline_mode<synchronous>, transform_indices = @transform_5, window_bounds = array<i64: 1, 128>}, {pipeline_mode = #tpu.pipeline_mode<synchronous>, transform_indices = @transform_6, window_bounds = array<i64: 1, 32>}, {pipeline_mode = #tpu.pipeline_mode<synchronous>, transform_indices = @transform_7, window_bounds = array<i64: 1, 1>}, {pipeline_mode = #tpu.pipeline_mode<synchronous>, transform_indices = @transform_8, window_bounds = array<i64: 8, 1>}]} {
    %0 = tpu.iota {dimensions = array<i32: 1>} : vector<8x128xi32>
    %c64_i32 = arith.constant 64 : i32
    %1 = vector.broadcast %c64_i32 : i32 to vector<8x128xi32>
    %2 = arith.cmpi sge, %0, %1 : vector<8x128xi32>
    %c96_i32 = arith.constant 96 : i32
    %3 = vector.broadcast %c96_i32 : i32 to vector<8x128xi32>
    %4 = arith.cmpi slt, %0, %3 : vector<8x128xi32>
    %5 = arith.andi %2, %4 : vector<8x128xi1>
    %c0 = arith.constant 0 : index
    %c0_0 = arith.constant 0 : index
    %6 = vector.load %arg3[%c0, %c0_0] : memref<32x128xf32, #tpu.memory_space<vmem>>, vector<32x128xf32>
    %c0_1 = arith.constant 0 : index
    %c0_2 = arith.constant 0 : index
    %7 = vector.load %arg5[%c0_1, %c0_2] : memref<64x128xf32, #tpu.memory_space<vmem>>, vector<64x128xf32>
    %c0_3 = arith.constant 0 : index
    %c0_4 = arith.constant 0 : index
    %8 = vector.load %arg6[%c0_3, %c0_4] : memref<1x128xf32, #tpu.memory_space<vmem>>, vector<1x128xf32>
    %c0_5 = arith.constant 0 : index
    %c0_6 = arith.constant 0 : index
    %9 = vector.load %arg1[%c0_5, %c0_6] : memref<64x16xf32, #tpu.memory_space<vmem>>, vector<64x16xf32>
    %c0_7 = arith.constant 0 : index
    %c0_8 = arith.constant 0 : index
    %10 = vector.load %arg2[%c0_7, %c0_8] : memref<16x128xf32, #tpu.memory_space<vmem>>, vector<16x128xf32>
    %cst = arith.constant dense<0.000000e+00> : vector<64x128xf32>
    %11 = tpu.matmul %9, %10, %cst {dimension_numbers = #tpu.dot_dimension_numbers<[1], [0], [0], [1], [0, 0, 1, 1], [], []>} : vector<64x16xf32>, vector<16x128xf32>, vector<64x128xf32> -> vector<64x128xf32>
    %c0_9 = arith.constant 0 : index
    %c0_10 = arith.constant 0 : index
    %12 = vector.load %arg4[%c0_9, %c0_10] : memref<1x128xf32, #tpu.memory_space<vmem>>, vector<1x128xf32>
    %13 = vector.broadcast %12 : vector<1x128xf32> to vector<64x128xf32>
    %14 = arith.addf %11, %13 : vector<64x128xf32>
    %c0_11 = arith.constant 0 : index
    %c0_12 = arith.constant 0 : index
    %15 = vector.load %arg10[%c0_11, %c0_12] : memref<64x128xf32, #tpu.memory_space<vmem>>, vector<64x128xf32>
    tpu.vector_store %arg10[%c0_11, %c0_12], %14 {strides = array<i32>} : memref<64x128xf32, #tpu.memory_space<vmem>>, vector<64x128xf32>,
    %cst_13 = arith.constant 0.000000e+00 : f32
    %16 = vector.broadcast %cst_13 : f32 to vector<8x32xf32>
    %c0_14 = arith.constant 0 : index
    %c0_15 = arith.constant 0 : index
    %17 = vector.load %arg10[%c0_14, %c0_15] : memref<64x128xf32, #tpu.memory_space<vmem>>, vector<8x128xf32>
    %cst_16 = arith.constant dense<0.000000e+00> : vector<8x128xf32>
    %18 = tpu.matmul %16, %6, %cst_16 {dimension_numbers = #tpu.dot_dimension_numbers<[1], [0], [0], [1], [0, 0, 1, 1], [], []>} : vector<8x32xf32>, vector<32x128xf32>, vector<8x128xf32> -> vector<8x128xf32>
    %19 = arith.addf %17, %18 : vector<8x128xf32>
    %cst_17 = arith.constant 5.000000e-01 : f32
    %20 = vector.broadcast %cst_17 : f32 to vector<8x128xf32>
    %21 = arith.mulf %20, %19 : vector<8x128xf32>
    %22 = arith.select %5, %19, %21 : vector<8x128xi1>, vector<8x128xf32>
    %23 = math.tanh %22 : vector<8x128xf32>
    %cst_18 = arith.constant 1.000000e+00 : f32
    %24 = vector.broadcast %cst_18 : f32 to vector<8x128xf32>
    %25 = arith.addf %23, %24 : vector<8x128xf32>
    %cst_19 = arith.constant 5.000000e-01 : f32
    %26 = vector.broadcast %cst_19 : f32 to vector<8x128xf32>
    %27 = arith.mulf %26, %25 : vector<8x128xf32>
    %28 = arith.select %5, %23, %27 : vector<8x128xi1>, vector<8x128xf32>
    %29 = vector.extract_strided_slice %28 {offsets = [0, 0], sizes = [8, 32], strides = [1, 1]} : vector<8x128xf32> to vector<8x32xf32>
    %30 = vector.extract_strided_slice %28 {offsets = [0, 32], sizes = [8, 32], strides = [1, 1]} : vector<8x128xf32> to vector<8x32xf32>
    %31 = vector.extract_strided_slice %28 {offsets = [0, 64], sizes = [8, 32], strides = [1, 1]} : vector<8x128xf32> to vector<8x32xf32>
    %32 = vector.extract_strided_slice %28 {offsets = [0, 96], sizes = [8, 32], strides = [1, 1]} : vector<8x128xf32> to vector<8x32xf32>
    %33 = arith.mulf %30, %16 : vector<8x32xf32>
    %34 = arith.mulf %29, %31 : vector<8x32xf32>
    %35 = arith.addf %33, %34 : vector<8x32xf32>
    %36 = math.tanh %35 : vector<8x32xf32>
    %37 = arith.mulf %32, %36 : vector<8x32xf32>
    %c8 = arith.constant 8 : index
    %c0_20 = arith.constant 0 : index
    %38 = vector.load %arg10[%c8, %c0_20] : memref<64x128xf32, #tpu.memory_space<vmem>>, vector<8x128xf32>
    %cst_21 = arith.constant dense<0.000000e+00> : vector<8x128xf32>
    %39 = tpu.matmul %37, %6, %cst_21 {dimension_numbers = #tpu.dot_dimension_numbers<[1], [0], [0], [1], [0, 0, 1, 1], [], []>} : vector<8x32xf32>, vector<32x128xf32>, vector<8x128xf32> -> vector<8x128xf32>
    %40 = arith.addf %38, %39 : vector<8x128xf32>
    %cst_22 = arith.constant 5.000000e-01 : f32
    %41 = vector.broadcast %cst_22 : f32 to vector<8x128xf32>
    %42 = arith.mulf %41, %40 : vector<8x128xf32>
    %43 = arith.select %5, %40, %42 : vector<8x128xi1>, vector<8x128xf32>
    %44 = math.tanh %43 : vector<8x128xf32>
    %cst_23 = arith.constant 1.000000e+00 : f32
    %45 = vector.broadcast %cst_23 : f32 to vector<8x128xf32>
    %46 = arith.addf %44, %45 : vector<8x128xf32>
    %cst_24 = arith.constant 5.000000e-01 : f32
    %47 = vector.broadcast %cst_24 : f32 to vector<8x128xf32>
    %48 = arith.mulf %47, %46 : vector<8x128xf32>
    %49 = arith.select %5, %44, %48 : vector<8x128xi1>, vector<8x128xf32>
    %50 = vector.extract_strided_slice %49 {offsets = [0, 0], sizes = [8, 32], strides = [1, 1]} : vector<8x128xf32> to vector<8x32xf32>
    %51 = vector.extract_strided_slice %49 {offsets = [0, 32], sizes = [8, 32], strides = [1, 1]} : vector<8x128xf32> to vector<8x32xf32>
    %52 = vector.extract_strided_slice %49 {offsets = [0, 64], sizes = [8, 32], strides = [1, 1]} : vector<8x128xf32> to vector<8x32xf32>
    %53 = vector.extract_strided_slice %49 {offsets = [0, 96], sizes = [8, 32], strides = [1, 1]} : vector<8x128xf32> to vector<8x32xf32>
    %54 = arith.mulf %51, %35 : vector<8x32xf32>
    %55 = arith.mulf %50, %52 : vector<8x32xf32>
    %56 = arith.addf %54, %55 : vector<8x32xf32>
    %57 = math.tanh %56 : vector<8x32xf32>
    %58 = arith.mulf %53, %57 : vector<8x32xf32>
    %59 = tpu.concatenate %37, %16 in 1 : vector<8x32xf32>, vector<8x32xf32> -> vector<8x64xf32>
    %cst_25 = arith.constant dense<0.000000e+00> : vector<8x128xf32>
    %60 = tpu.matmul %59, %7, %cst_25 {dimension_numbers = #tpu.dot_dimension_numbers<[1], [0], [0], [1], [0, 0, 1, 1], [], []>} : vector<8x64xf32>, vector<64x128xf32>, vector<8x128xf32> -> vector<8x128xf32>
    %61 = vector.broadcast %8 : vector<1x128xf32> to vector<8x128xf32>
    %62 = arith.addf %60, %61 : vector<8x128xf32>
    %cst_26 = arith.constant 5.000000e-01 : f32
    %63 = vector.broadcast %cst_26 : f32 to vector<8x128xf32>
    %64 = arith.mulf %63, %62 : vector<8x128xf32>
    %65 = arith.select %5, %62, %64 : vector<8x128xi1>, vector<8x128xf32>
    %66 = math.tanh %65 : vector<8x128xf32>
    %cst_27 = arith.constant 1.000000e+00 : f32
    %67 = vector.broadcast %cst_27 : f32 to vector<8x128xf32>
    %68 = arith.addf %66, %67 : vector<8x128xf32>
    %cst_28 = arith.constant 5.000000e-01 : f32
    %69 = vector.broadcast %cst_28 : f32 to vector<8x128xf32>
    %70 = arith.mulf %69, %68 : vector<8x128xf32>
    %71 = arith.select %5, %66, %70 : vector<8x128xi1>, vector<8x128xf32>
    %72 = vector.extract_strided_slice %71 {offsets = [0, 0], sizes = [8, 32], strides = [1, 1]} : vector<8x128xf32> to vector<8x32xf32>
    %73 = vector.extract_strided_slice %71 {offsets = [0, 32], sizes = [8, 32], strides = [1, 1]} : vector<8x128xf32> to vector<8x32xf32>
    %74 = vector.extract_strided_slice %71 {offsets = [0, 64], sizes = [8, 32], strides = [1, 1]} : vector<8x128xf32> to vector<8x32xf32>
    %75 = vector.extract_strided_slice %71 {offsets = [0, 96], sizes = [8, 32], strides = [1, 1]} : vector<8x128xf32> to vector<8x32xf32>
    %76 = arith.mulf %73, %16 : vector<8x32xf32>
    %77 = arith.mulf %72, %74 : vector<8x32xf32>
    %78 = arith.addf %76, %77 : vector<8x32xf32>
    %79 = math.tanh %78 : vector<8x32xf32>
    %80 = arith.mulf %75, %79 : vector<8x32xf32>
    %c16 = arith.constant 16 : index
    %c0_29 = arith.constant 0 : index
    %81 = vector.load %arg10[%c16, %c0_29] : memref<64x128xf32, #tpu.memory_space<vmem>>, vector<8x128xf32>
    %cst_30 = arith.constant dense<0.000000e+00> : vector<8x128xf32>
    %82 = tpu.matmul %58, %6, %cst_30 {dimension_numbers = #tpu.dot_dimension_numbers<[1], [0], [0], [1], [0, 0, 1, 1], [], []>} : vector<8x32xf32>, vector<32x128xf32>, vector<8x128xf32> -> vector<8x128xf32>
    %83 = arith.addf %81, %82 : vector<8x128xf32>
    %cst_31 = arith.constant 5.000000e-01 : f32
    %84 = vector.broadcast %cst_31 : f32 to vector<8x128xf32>
    %85 = arith.mulf %84, %83 : vector<8x128xf32>
    %86 = arith.select %5, %83, %85 : vector<8x128xi1>, vector<8x128xf32>
    %87 = math.tanh %86 : vector<8x128xf32>
    %cst_32 = arith.constant 1.000000e+00 : f32
    %88 = vector.broadcast %cst_32 : f32 to vector<8x128xf32>
    %89 = arith.addf %87, %88 : vector<8x128xf32>
    %cst_33 = arith.constant 5.000000e-01 : f32
    %90 = vector.broadcast %cst_33 : f32 to vector<8x128xf32>
    %91 = arith.mulf %90, %89 : vector<8x128xf32>
    %92 = arith.select %5, %87, %91 : vector<8x128xi1>, vector<8x128xf32>
    %93 = vector.extract_strided_slice %92 {offsets = [0, 0], sizes = [8, 32], strides = [1, 1]} : vector<8x128xf32> to vector<8x32xf32>
    %94 = vector.extract_strided_slice %92 {offsets = [0, 32], sizes = [8, 32], strides = [1, 1]} : vector<8x128xf32> to vector<8x32xf32>
    %95 = vector.extract_strided_slice %92 {offsets = [0, 64], sizes = [8, 32], strides = [1, 1]} : vector<8x128xf32> to vector<8x32xf32>
    %96 = vector.extract_strided_slice %92 {offsets = [0, 96], sizes = [8, 32], strides = [1, 1]} : vector<8x128xf32> to vector<8x32xf32>
    %97 = arith.mulf %94, %56 : vector<8x32xf32>
    %98 = arith.mulf %93, %95 : vector<8x32xf32>
    %99 = arith.addf %97, %98 : vector<8x32xf32>
    %100 = math.tanh %99 : vector<8x32xf32>
    %101 = arith.mulf %96, %100 : vector<8x32xf32>
    %102 = tpu.concatenate %58, %80 in 1 : vector<8x32xf32>, vector<8x32xf32> -> vector<8x64xf32>
    %cst_34 = arith.constant dense<0.000000e+00> : vector<8x128xf32>
    %103 = tpu.matmul %102, %7, %cst_34 {dimension_numbers = #tpu.dot_dimension_numbers<[1], [0], [0], [1], [0, 0, 1, 1], [], []>} : vector<8x64xf32>, vector<64x128xf32>, vector<8x128xf32> -> vector<8x128xf32>
    %104 = vector.broadcast %8 : vector<1x128xf32> to vector<8x128xf32>
    %105 = arith.addf %103, %104 : vector<8x128xf32>
    %cst_35 = arith.constant 5.000000e-01 : f32
    %106 = vector.broadcast %cst_35 : f32 to vector<8x128xf32>
    %107 = arith.mulf %106, %105 : vector<8x128xf32>
    %108 = arith.select %5, %105, %107 : vector<8x128xi1>, vector<8x128xf32>
    %109 = math.tanh %108 : vector<8x128xf32>
    %cst_36 = arith.constant 1.000000e+00 : f32
    %110 = vector.broadcast %cst_36 : f32 to vector<8x128xf32>
    %111 = arith.addf %109, %110 : vector<8x128xf32>
    %cst_37 = arith.constant 5.000000e-01 : f32
    %112 = vector.broadcast %cst_37 : f32 to vector<8x128xf32>
    %113 = arith.mulf %112, %111 : vector<8x128xf32>
    %114 = arith.select %5, %109, %113 : vector<8x128xi1>, vector<8x128xf32>
    %115 = vector.extract_strided_slice %114 {offsets = [0, 0], sizes = [8, 32], strides = [1, 1]} : vector<8x128xf32> to vector<8x32xf32>
    %116 = vector.extract_strided_slice %114 {offsets = [0, 32], sizes = [8, 32], strides = [1, 1]} : vector<8x128xf32> to vector<8x32xf32>
    %117 = vector.extract_strided_slice %114 {offsets = [0, 64], sizes = [8, 32], strides = [1, 1]} : vector<8x128xf32> to vector<8x32xf32>
    %118 = vector.extract_strided_slice %114 {offsets = [0, 96], sizes = [8, 32], strides = [1, 1]} : vector<8x128xf32> to vector<8x32xf32>
    %119 = arith.mulf %116, %78 : vector<8x32xf32>
    %120 = arith.mulf %115, %117 : vector<8x32xf32>
    %121 = arith.addf %119, %120 : vector<8x32xf32>
    %122 = math.tanh %121 : vector<8x32xf32>
    %123 = arith.mulf %118, %122 : vector<8x32xf32>
    %c24 = arith.constant 24 : index
    %c0_38 = arith.constant 0 : index
    %124 = vector.load %arg10[%c24, %c0_38] : memref<64x128xf32, #tpu.memory_space<vmem>>, vector<8x128xf32>
    %cst_39 = arith.constant dense<0.000000e+00> : vector<8x128xf32>
    %125 = tpu.matmul %101, %6, %cst_39 {dimension_numbers = #tpu.dot_dimension_numbers<[1], [0], [0], [1], [0, 0, 1, 1], [], []>} : vector<8x32xf32>, vector<32x128xf32>, vector<8x128xf32> -> vector<8x128xf32>
    %126 = arith.addf %124, %125 : vector<8x128xf32>
    %cst_40 = arith.constant 5.000000e-01 : f32
    %127 = vector.broadcast %cst_40 : f32 to vector<8x128xf32>
    %128 = arith.mulf %127, %126 : vector<8x128xf32>
    %129 = arith.select %5, %126, %128 : vector<8x128xi1>, vector<8x128xf32>
    %130 = math.tanh %129 : vector<8x128xf32>
    %cst_41 = arith.constant 1.000000e+00 : f32
    %131 = vector.broadcast %cst_41 : f32 to vector<8x128xf32>
    %132 = arith.addf %130, %131 : vector<8x128xf32>
    %cst_42 = arith.constant 5.000000e-01 : f32
    %133 = vector.broadcast %cst_42 : f32 to vector<8x128xf32>
    %134 = arith.mulf %133, %132 : vector<8x128xf32>
    %135 = arith.select %5, %130, %134 : vector<8x128xi1>, vector<8x128xf32>
    %136 = vector.extract_strided_slice %135 {offsets = [0, 0], sizes = [8, 32], strides = [1, 1]} : vector<8x128xf32> to vector<8x32xf32>
    %137 = vector.extract_strided_slice %135 {offsets = [0, 32], sizes = [8, 32], strides = [1, 1]} : vector<8x128xf32> to vector<8x32xf32>
    %138 = vector.extract_strided_slice %135 {offsets = [0, 64], sizes = [8, 32], strides = [1, 1]} : vector<8x128xf32> to vector<8x32xf32>
    %139 = vector.extract_strided_slice %135 {offsets = [0, 96], sizes = [8, 32], strides = [1, 1]} : vector<8x128xf32> to vector<8x32xf32>
    %140 = arith.mulf %137, %99 : vector<8x32xf32>
    %141 = arith.mulf %136, %138 : vector<8x32xf32>
    %142 = arith.addf %140, %141 : vector<8x32xf32>
    %143 = math.tanh %142 : vector<8x32xf32>
    %144 = arith.mulf %139, %143 : vector<8x32xf32>
    %145 = tpu.concatenate %101, %123 in 1 : vector<8x32xf32>, vector<8x32xf32> -> vector<8x64xf32>
    %cst_43 = arith.constant dense<0.000000e+00> : vector<8x128xf32>
    %146 = tpu.matmul %145, %7, %cst_43 {dimension_numbers = #tpu.dot_dimension_numbers<[1], [0], [0], [1], [0, 0, 1, 1], [], []>} : vector<8x64xf32>, vector<64x128xf32>, vector<8x128xf32> -> vector<8x128xf32>
    %147 = vector.broadcast %8 : vector<1x128xf32> to vector<8x128xf32>
    %148 = arith.addf %146, %147 : vector<8x128xf32>
    %cst_44 = arith.constant 5.000000e-01 : f32
    %149 = vector.broadcast %cst_44 : f32 to vector<8x128xf32>
    %150 = arith.mulf %149, %148 : vector<8x128xf32>
    %151 = arith.select %5, %148, %150 : vector<8x128xi1>, vector<8x128xf32>
    %152 = math.tanh %151 : vector<8x128xf32>
    %cst_45 = arith.constant 1.000000e+00 : f32
    %153 = vector.broadcast %cst_45 : f32 to vector<8x128xf32>
    %154 = arith.addf %152, %153 : vector<8x128xf32>
    %cst_46 = arith.constant 5.000000e-01 : f32
    %155 = vector.broadcast %cst_46 : f32 to vector<8x128xf32>
    %156 = arith.mulf %155, %154 : vector<8x128xf32>
    %157 = arith.select %5, %152, %156 : vector<8x128xi1>, vector<8x128xf32>
    %158 = vector.extract_strided_slice %157 {offsets = [0, 0], sizes = [8, 32], strides = [1, 1]} : vector<8x128xf32> to vector<8x32xf32>
    %159 = vector.extract_strided_slice %157 {offsets = [0, 32], sizes = [8, 32], strides = [1, 1]} : vector<8x128xf32> to vector<8x32xf32>
    %160 = vector.extract_strided_slice %157 {offsets = [0, 64], sizes = [8, 32], strides = [1, 1]} : vector<8x128xf32> to vector<8x32xf32>
    %161 = vector.extract_strided_slice %157 {offsets = [0, 96], sizes = [8, 32], strides = [1, 1]} : vector<8x128xf32> to vector<8x32xf32>
    %162 = arith.mulf %159, %121 : vector<8x32xf32>
    %163 = arith.mulf %158, %160 : vector<8x32xf32>
    %164 = arith.addf %162, %163 : vector<8x32xf32>
    %165 = math.tanh %164 : vector<8x32xf32>
    %166 = arith.mulf %161, %165 : vector<8x32xf32>
    %c32 = arith.constant 32 : index
    %c0_47 = arith.constant 0 : index
    %167 = vector.load %arg10[%c32, %c0_47] : memref<64x128xf32, #tpu.memory_space<vmem>>, vector<8x128xf32>
    %cst_48 = arith.constant dense<0.000000e+00> : vector<8x128xf32>
    %168 = tpu.matmul %144, %6, %cst_48 {dimension_numbers = #tpu.dot_dimension_numbers<[1], [0], [0], [1], [0, 0, 1, 1], [], []>} : vector<8x32xf32>, vector<32x128xf32>, vector<8x128xf32> -> vector<8x128xf32>
    %169 = arith.addf %167, %168 : vector<8x128xf32>
    %cst_49 = arith.constant 5.000000e-01 : f32
    %170 = vector.broadcast %cst_49 : f32 to vector<8x128xf32>
    %171 = arith.mulf %170, %169 : vector<8x128xf32>
    %172 = arith.select %5, %169, %171 : vector<8x128xi1>, vector<8x128xf32>
    %173 = math.tanh %172 : vector<8x128xf32>
    %cst_50 = arith.constant 1.000000e+00 : f32
    %174 = vector.broadcast %cst_50 : f32 to vector<8x128xf32>
    %175 = arith.addf %173, %174 : vector<8x128xf32>
    %cst_51 = arith.constant 5.000000e-01 : f32
    %176 = vector.broadcast %cst_51 : f32 to vector<8x128xf32>
    %177 = arith.mulf %176, %175 : vector<8x128xf32>
    %178 = arith.select %5, %173, %177 : vector<8x128xi1>, vector<8x128xf32>
    %179 = vector.extract_strided_slice %178 {offsets = [0, 0], sizes = [8, 32], strides = [1, 1]} : vector<8x128xf32> to vector<8x32xf32>
    %180 = vector.extract_strided_slice %178 {offsets = [0, 32], sizes = [8, 32], strides = [1, 1]} : vector<8x128xf32> to vector<8x32xf32>
    %181 = vector.extract_strided_slice %178 {offsets = [0, 64], sizes = [8, 32], strides = [1, 1]} : vector<8x128xf32> to vector<8x32xf32>
    %182 = vector.extract_strided_slice %178 {offsets = [0, 96], sizes = [8, 32], strides = [1, 1]} : vector<8x128xf32> to vector<8x32xf32>
    %183 = arith.mulf %180, %142 : vector<8x32xf32>
    %184 = arith.mulf %179, %181 : vector<8x32xf32>
    %185 = arith.addf %183, %184 : vector<8x32xf32>
    %186 = math.tanh %185 : vector<8x32xf32>
    %187 = arith.mulf %182, %186 : vector<8x32xf32>
    %188 = tpu.concatenate %144, %166 in 1 : vector<8x32xf32>, vector<8x32xf32> -> vector<8x64xf32>
    %cst_52 = arith.constant dense<0.000000e+00> : vector<8x128xf32>
    %189 = tpu.matmul %188, %7, %cst_52 {dimension_numbers = #tpu.dot_dimension_numbers<[1], [0], [0], [1], [0, 0, 1, 1], [], []>} : vector<8x64xf32>, vector<64x128xf32>, vector<8x128xf32> -> vector<8x128xf32>
    %190 = vector.broadcast %8 : vector<1x128xf32> to vector<8x128xf32>
    %191 = arith.addf %189, %190 : vector<8x128xf32>
    %cst_53 = arith.constant 5.000000e-01 : f32
    %192 = vector.broadcast %cst_53 : f32 to vector<8x128xf32>
    %193 = arith.mulf %192, %191 : vector<8x128xf32>
    %194 = arith.select %5, %191, %193 : vector<8x128xi1>, vector<8x128xf32>
    %195 = math.tanh %194 : vector<8x128xf32>
    %cst_54 = arith.constant 1.000000e+00 : f32
    %196 = vector.broadcast %cst_54 : f32 to vector<8x128xf32>
    %197 = arith.addf %195, %196 : vector<8x128xf32>
    %cst_55 = arith.constant 5.000000e-01 : f32
    %198 = vector.broadcast %cst_55 : f32 to vector<8x128xf32>
    %199 = arith.mulf %198, %197 : vector<8x128xf32>
    %200 = arith.select %5, %195, %199 : vector<8x128xi1>, vector<8x128xf32>
    %201 = vector.extract_strided_slice %200 {offsets = [0, 0], sizes = [8, 32], strides = [1, 1]} : vector<8x128xf32> to vector<8x32xf32>
    %202 = vector.extract_strided_slice %200 {offsets = [0, 32], sizes = [8, 32], strides = [1, 1]} : vector<8x128xf32> to vector<8x32xf32>
    %203 = vector.extract_strided_slice %200 {offsets = [0, 64], sizes = [8, 32], strides = [1, 1]} : vector<8x128xf32> to vector<8x32xf32>
    %204 = vector.extract_strided_slice %200 {offsets = [0, 96], sizes = [8, 32], strides = [1, 1]} : vector<8x128xf32> to vector<8x32xf32>
    %205 = arith.mulf %202, %164 : vector<8x32xf32>
    %206 = arith.mulf %201, %203 : vector<8x32xf32>
    %207 = arith.addf %205, %206 : vector<8x32xf32>
    %208 = math.tanh %207 : vector<8x32xf32>
    %209 = arith.mulf %204, %208 : vector<8x32xf32>
    %c40 = arith.constant 40 : index
    %c0_56 = arith.constant 0 : index
    %210 = vector.load %arg10[%c40, %c0_56] : memref<64x128xf32, #tpu.memory_space<vmem>>, vector<8x128xf32>
    %cst_57 = arith.constant dense<0.000000e+00> : vector<8x128xf32>
    %211 = tpu.matmul %187, %6, %cst_57 {dimension_numbers = #tpu.dot_dimension_numbers<[1], [0], [0], [1], [0, 0, 1, 1], [], []>} : vector<8x32xf32>, vector<32x128xf32>, vector<8x128xf32> -> vector<8x128xf32>
    %212 = arith.addf %210, %211 : vector<8x128xf32>
    %cst_58 = arith.constant 5.000000e-01 : f32
    %213 = vector.broadcast %cst_58 : f32 to vector<8x128xf32>
    %214 = arith.mulf %213, %212 : vector<8x128xf32>
    %215 = arith.select %5, %212, %214 : vector<8x128xi1>, vector<8x128xf32>
    %216 = math.tanh %215 : vector<8x128xf32>
    %cst_59 = arith.constant 1.000000e+00 : f32
    %217 = vector.broadcast %cst_59 : f32 to vector<8x128xf32>
    %218 = arith.addf %216, %217 : vector<8x128xf32>
    %cst_60 = arith.constant 5.000000e-01 : f32
    %219 = vector.broadcast %cst_60 : f32 to vector<8x128xf32>
    %220 = arith.mulf %219, %218 : vector<8x128xf32>
    %221 = arith.select %5, %216, %220 : vector<8x128xi1>, vector<8x128xf32>
    %222 = vector.extract_strided_slice %221 {offsets = [0, 0], sizes = [8, 32], strides = [1, 1]} : vector<8x128xf32> to vector<8x32xf32>
    %223 = vector.extract_strided_slice %221 {offsets = [0, 32], sizes = [8, 32], strides = [1, 1]} : vector<8x128xf32> to vector<8x32xf32>
    %224 = vector.extract_strided_slice %221 {offsets = [0, 64], sizes = [8, 32], strides = [1, 1]} : vector<8x128xf32> to vector<8x32xf32>
    %225 = vector.extract_strided_slice %221 {offsets = [0, 96], sizes = [8, 32], strides = [1, 1]} : vector<8x128xf32> to vector<8x32xf32>
    %226 = arith.mulf %223, %185 : vector<8x32xf32>
    %227 = arith.mulf %222, %224 : vector<8x32xf32>
    %228 = arith.addf %226, %227 : vector<8x32xf32>
    %229 = math.tanh %228 : vector<8x32xf32>
    %230 = arith.mulf %225, %229 : vector<8x32xf32>
    %231 = tpu.concatenate %187, %209 in 1 : vector<8x32xf32>, vector<8x32xf32> -> vector<8x64xf32>
    %cst_61 = arith.constant dense<0.000000e+00> : vector<8x128xf32>
    %232 = tpu.matmul %231, %7, %cst_61 {dimension_numbers = #tpu.dot_dimension_numbers<[1], [0], [0], [1], [0, 0, 1, 1], [], []>} : vector<8x64xf32>, vector<64x128xf32>, vector<8x128xf32> -> vector<8x128xf32>
    %233 = vector.broadcast %8 : vector<1x128xf32> to vector<8x128xf32>
    %234 = arith.addf %232, %233 : vector<8x128xf32>
    %cst_62 = arith.constant 5.000000e-01 : f32
    %235 = vector.broadcast %cst_62 : f32 to vector<8x128xf32>
    %236 = arith.mulf %235, %234 : vector<8x128xf32>
    %237 = arith.select %5, %234, %236 : vector<8x128xi1>, vector<8x128xf32>
    %238 = math.tanh %237 : vector<8x128xf32>
    %cst_63 = arith.constant 1.000000e+00 : f32
    %239 = vector.broadcast %cst_63 : f32 to vector<8x128xf32>
    %240 = arith.addf %238, %239 : vector<8x128xf32>
    %cst_64 = arith.constant 5.000000e-01 : f32
    %241 = vector.broadcast %cst_64 : f32 to vector<8x128xf32>
    %242 = arith.mulf %241, %240 : vector<8x128xf32>
    %243 = arith.select %5, %238, %242 : vector<8x128xi1>, vector<8x128xf32>
    %244 = vector.extract_strided_slice %243 {offsets = [0, 0], sizes = [8, 32], strides = [1, 1]} : vector<8x128xf32> to vector<8x32xf32>
    %245 = vector.extract_strided_slice %243 {offsets = [0, 32], sizes = [8, 32], strides = [1, 1]} : vector<8x128xf32> to vector<8x32xf32>
    %246 = vector.extract_strided_slice %243 {offsets = [0, 64], sizes = [8, 32], strides = [1, 1]} : vector<8x128xf32> to vector<8x32xf32>
    %247 = vector.extract_strided_slice %243 {offsets = [0, 96], sizes = [8, 32], strides = [1, 1]} : vector<8x128xf32> to vector<8x32xf32>
    %248 = arith.mulf %245, %207 : vector<8x32xf32>
    %249 = arith.mulf %244, %246 : vector<8x32xf32>
    %250 = arith.addf %248, %249 : vector<8x32xf32>
    %251 = math.tanh %250 : vector<8x32xf32>
    %252 = arith.mulf %247, %251 : vector<8x32xf32>
    %c48 = arith.constant 48 : index
    %c0_65 = arith.constant 0 : index
    %253 = vector.load %arg10[%c48, %c0_65] : memref<64x128xf32, #tpu.memory_space<vmem>>, vector<8x128xf32>
    %cst_66 = arith.constant dense<0.000000e+00> : vector<8x128xf32>
    %254 = tpu.matmul %230, %6, %cst_66 {dimension_numbers = #tpu.dot_dimension_numbers<[1], [0], [0], [1], [0, 0, 1, 1], [], []>} : vector<8x32xf32>, vector<32x128xf32>, vector<8x128xf32> -> vector<8x128xf32>
    %255 = arith.addf %253, %254 : vector<8x128xf32>
    %cst_67 = arith.constant 5.000000e-01 : f32
    %256 = vector.broadcast %cst_67 : f32 to vector<8x128xf32>
    %257 = arith.mulf %256, %255 : vector<8x128xf32>
    %258 = arith.select %5, %255, %257 : vector<8x128xi1>, vector<8x128xf32>
    %259 = math.tanh %258 : vector<8x128xf32>
    %cst_68 = arith.constant 1.000000e+00 : f32
    %260 = vector.broadcast %cst_68 : f32 to vector<8x128xf32>
    %261 = arith.addf %259, %260 : vector<8x128xf32>
    %cst_69 = arith.constant 5.000000e-01 : f32
    %262 = vector.broadcast %cst_69 : f32 to vector<8x128xf32>
    %263 = arith.mulf %262, %261 : vector<8x128xf32>
    %264 = arith.select %5, %259, %263 : vector<8x128xi1>, vector<8x128xf32>
    %265 = vector.extract_strided_slice %264 {offsets = [0, 0], sizes = [8, 32], strides = [1, 1]} : vector<8x128xf32> to vector<8x32xf32>
    %266 = vector.extract_strided_slice %264 {offsets = [0, 32], sizes = [8, 32], strides = [1, 1]} : vector<8x128xf32> to vector<8x32xf32>
    %267 = vector.extract_strided_slice %264 {offsets = [0, 64], sizes = [8, 32], strides = [1, 1]} : vector<8x128xf32> to vector<8x32xf32>
    %268 = vector.extract_strided_slice %264 {offsets = [0, 96], sizes = [8, 32], strides = [1, 1]} : vector<8x128xf32> to vector<8x32xf32>
    %269 = arith.mulf %266, %228 : vector<8x32xf32>
    %270 = arith.mulf %265, %267 : vector<8x32xf32>
    %271 = arith.addf %269, %270 : vector<8x32xf32>
    %272 = math.tanh %271 : vector<8x32xf32>
    %273 = arith.mulf %268, %272 : vector<8x32xf32>
    %274 = tpu.concatenate %230, %252 in 1 : vector<8x32xf32>, vector<8x32xf32> -> vector<8x64xf32>
    %cst_70 = arith.constant dense<0.000000e+00> : vector<8x128xf32>
    %275 = tpu.matmul %274, %7, %cst_70 {dimension_numbers = #tpu.dot_dimension_numbers<[1], [0], [0], [1], [0, 0, 1, 1], [], []>} : vector<8x64xf32>, vector<64x128xf32>, vector<8x128xf32> -> vector<8x128xf32>
    %276 = vector.broadcast %8 : vector<1x128xf32> to vector<8x128xf32>
    %277 = arith.addf %275, %276 : vector<8x128xf32>
    %cst_71 = arith.constant 5.000000e-01 : f32
    %278 = vector.broadcast %cst_71 : f32 to vector<8x128xf32>
    %279 = arith.mulf %278, %277 : vector<8x128xf32>
    %280 = arith.select %5, %277, %279 : vector<8x128xi1>, vector<8x128xf32>
    %281 = math.tanh %280 : vector<8x128xf32>
    %cst_72 = arith.constant 1.000000e+00 : f32
    %282 = vector.broadcast %cst_72 : f32 to vector<8x128xf32>
    %283 = arith.addf %281, %282 : vector<8x128xf32>
    %cst_73 = arith.constant 5.000000e-01 : f32
    %284 = vector.broadcast %cst_73 : f32 to vector<8x128xf32>
    %285 = arith.mulf %284, %283 : vector<8x128xf32>
    %286 = arith.select %5, %281, %285 : vector<8x128xi1>, vector<8x128xf32>
    %287 = vector.extract_strided_slice %286 {offsets = [0, 0], sizes = [8, 32], strides = [1, 1]} : vector<8x128xf32> to vector<8x32xf32>
    %288 = vector.extract_strided_slice %286 {offsets = [0, 32], sizes = [8, 32], strides = [1, 1]} : vector<8x128xf32> to vector<8x32xf32>
    %289 = vector.extract_strided_slice %286 {offsets = [0, 64], sizes = [8, 32], strides = [1, 1]} : vector<8x128xf32> to vector<8x32xf32>
    %290 = vector.extract_strided_slice %286 {offsets = [0, 96], sizes = [8, 32], strides = [1, 1]} : vector<8x128xf32> to vector<8x32xf32>
    %291 = arith.mulf %288, %250 : vector<8x32xf32>
    %292 = arith.mulf %287, %289 : vector<8x32xf32>
    %293 = arith.addf %291, %292 : vector<8x32xf32>
    %294 = math.tanh %293 : vector<8x32xf32>
    %295 = arith.mulf %290, %294 : vector<8x32xf32>
    %c56 = arith.constant 56 : index
    %c0_74 = arith.constant 0 : index
    %296 = vector.load %arg10[%c56, %c0_74] : memref<64x128xf32, #tpu.memory_space<vmem>>, vector<8x128xf32>
    %cst_75 = arith.constant dense<0.000000e+00> : vector<8x128xf32>
    %297 = tpu.matmul %273, %6, %cst_75 {dimension_numbers = #tpu.dot_dimension_numbers<[1], [0], [0], [1], [0, 0, 1, 1], [], []>} : vector<8x32xf32>, vector<32x128xf32>, vector<8x128xf32> -> vector<8x128xf32>
    %298 = arith.addf %296, %297 : vector<8x128xf32>
    %cst_76 = arith.constant 5.000000e-01 : f32
    %299 = vector.broadcast %cst_76 : f32 to vector<8x128xf32>
    %300 = arith.mulf %299, %298 : vector<8x128xf32>
    %301 = arith.select %5, %298, %300 : vector<8x128xi1>, vector<8x128xf32>
    %302 = math.tanh %301 : vector<8x128xf32>
    %cst_77 = arith.constant 1.000000e+00 : f32
    %303 = vector.broadcast %cst_77 : f32 to vector<8x128xf32>
    %304 = arith.addf %302, %303 : vector<8x128xf32>
    %cst_78 = arith.constant 5.000000e-01 : f32
    %305 = vector.broadcast %cst_78 : f32 to vector<8x128xf32>
    %306 = arith.mulf %305, %304 : vector<8x128xf32>
    %307 = arith.select %5, %302, %306 : vector<8x128xi1>, vector<8x128xf32>
    %308 = vector.extract_strided_slice %307 {offsets = [0, 0], sizes = [8, 32], strides = [1, 1]} : vector<8x128xf32> to vector<8x32xf32>
    %309 = vector.extract_strided_slice %307 {offsets = [0, 32], sizes = [8, 32], strides = [1, 1]} : vector<8x128xf32> to vector<8x32xf32>
    %310 = vector.extract_strided_slice %307 {offsets = [0, 64], sizes = [8, 32], strides = [1, 1]} : vector<8x128xf32> to vector<8x32xf32>
    %311 = vector.extract_strided_slice %307 {offsets = [0, 96], sizes = [8, 32], strides = [1, 1]} : vector<8x128xf32> to vector<8x32xf32>
    %312 = arith.mulf %309, %271 : vector<8x32xf32>
    %313 = arith.mulf %308, %310 : vector<8x32xf32>
    %314 = arith.addf %312, %313 : vector<8x32xf32>
    %315 = math.tanh %314 : vector<8x32xf32>
    %316 = arith.mulf %311, %315 : vector<8x32xf32>
    %317 = tpu.concatenate %273, %295 in 1 : vector<8x32xf32>, vector<8x32xf32> -> vector<8x64xf32>
    %cst_79 = arith.constant dense<0.000000e+00> : vector<8x128xf32>
    %318 = tpu.matmul %317, %7, %cst_79 {dimension_numbers = #tpu.dot_dimension_numbers<[1], [0], [0], [1], [0, 0, 1, 1], [], []>} : vector<8x64xf32>, vector<64x128xf32>, vector<8x128xf32> -> vector<8x128xf32>
    %319 = vector.broadcast %8 : vector<1x128xf32> to vector<8x128xf32>
    %320 = arith.addf %318, %319 : vector<8x128xf32>
    %cst_80 = arith.constant 5.000000e-01 : f32
    %321 = vector.broadcast %cst_80 : f32 to vector<8x128xf32>
    %322 = arith.mulf %321, %320 : vector<8x128xf32>
    %323 = arith.select %5, %320, %322 : vector<8x128xi1>, vector<8x128xf32>
    %324 = math.tanh %323 : vector<8x128xf32>
    %cst_81 = arith.constant 1.000000e+00 : f32
    %325 = vector.broadcast %cst_81 : f32 to vector<8x128xf32>
    %326 = arith.addf %324, %325 : vector<8x128xf32>
    %cst_82 = arith.constant 5.000000e-01 : f32
    %327 = vector.broadcast %cst_82 : f32 to vector<8x128xf32>
    %328 = arith.mulf %327, %326 : vector<8x128xf32>
    %329 = arith.select %5, %324, %328 : vector<8x128xi1>, vector<8x128xf32>
    %330 = vector.extract_strided_slice %329 {offsets = [0, 0], sizes = [8, 32], strides = [1, 1]} : vector<8x128xf32> to vector<8x32xf32>
    %331 = vector.extract_strided_slice %329 {offsets = [0, 32], sizes = [8, 32], strides = [1, 1]} : vector<8x128xf32> to vector<8x32xf32>
    %332 = vector.extract_strided_slice %329 {offsets = [0, 64], sizes = [8, 32], strides = [1, 1]} : vector<8x128xf32> to vector<8x32xf32>
    %333 = vector.extract_strided_slice %329 {offsets = [0, 96], sizes = [8, 32], strides = [1, 1]} : vector<8x128xf32> to vector<8x32xf32>
    %334 = arith.mulf %331, %293 : vector<8x32xf32>
    %335 = arith.mulf %330, %332 : vector<8x32xf32>
    %336 = arith.addf %334, %335 : vector<8x32xf32>
    %337 = math.tanh %336 : vector<8x32xf32>
    %338 = arith.mulf %333, %337 : vector<8x32xf32>
    %339 = tpu.concatenate %316, %338 in 1 : vector<8x32xf32>, vector<8x32xf32> -> vector<8x64xf32>
    %cst_83 = arith.constant dense<0.000000e+00> : vector<8x128xf32>
    %340 = tpu.matmul %339, %7, %cst_83 {dimension_numbers = #tpu.dot_dimension_numbers<[1], [0], [0], [1], [0, 0, 1, 1], [], []>} : vector<8x64xf32>, vector<64x128xf32>, vector<8x128xf32> -> vector<8x128xf32>
    %341 = vector.broadcast %8 : vector<1x128xf32> to vector<8x128xf32>
    %342 = arith.addf %340, %341 : vector<8x128xf32>
    %cst_84 = arith.constant 5.000000e-01 : f32
    %343 = vector.broadcast %cst_84 : f32 to vector<8x128xf32>
    %344 = arith.mulf %343, %342 : vector<8x128xf32>
    %345 = arith.select %5, %342, %344 : vector<8x128xi1>, vector<8x128xf32>
    %346 = math.tanh %345 : vector<8x128xf32>
    %cst_85 = arith.constant 1.000000e+00 : f32
    %347 = vector.broadcast %cst_85 : f32 to vector<8x128xf32>
    %348 = arith.addf %346, %347 : vector<8x128xf32>
    %cst_86 = arith.constant 5.000000e-01 : f32
    %349 = vector.broadcast %cst_86 : f32 to vector<8x128xf32>
    %350 = arith.mulf %349, %348 : vector<8x128xf32>
    %351 = arith.select %5, %346, %350 : vector<8x128xi1>, vector<8x128xf32>
    %352 = vector.extract_strided_slice %351 {offsets = [0, 0], sizes = [8, 32], strides = [1, 1]} : vector<8x128xf32> to vector<8x32xf32>
    %353 = vector.extract_strided_slice %351 {offsets = [0, 32], sizes = [8, 32], strides = [1, 1]} : vector<8x128xf32> to vector<8x32xf32>
    %354 = vector.extract_strided_slice %351 {offsets = [0, 64], sizes = [8, 32], strides = [1, 1]} : vector<8x128xf32> to vector<8x32xf32>
    %355 = vector.extract_strided_slice %351 {offsets = [0, 96], sizes = [8, 32], strides = [1, 1]} : vector<8x128xf32> to vector<8x32xf32>
    %356 = arith.mulf %353, %336 : vector<8x32xf32>
    %357 = arith.mulf %352, %354 : vector<8x32xf32>
    %358 = arith.addf %356, %357 : vector<8x32xf32>
    %359 = math.tanh %358 : vector<8x32xf32>
    %360 = arith.mulf %355, %359 : vector<8x32xf32>
    %c0_87 = arith.constant 0 : index
    %c0_88 = arith.constant 0 : index
    %361 = vector.load %arg7[%c0_87, %c0_88] : memref<1x32xf32, #tpu.memory_space<vmem>>, vector<1x32xf32>
    %362 = vector.broadcast %361 : vector<1x32xf32> to vector<8x32xf32>
    %363 = arith.mulf %360, %362 : vector<8x32xf32>
    %cst_89 = arith.constant dense<0.000000e+00> : vector<8xf32>
    %364 = vector.multi_reduction <add>, %363, %cst_89 [1] : vector<8x32xf32> to vector<8xf32>
    %365 = vector.shape_cast %364 : vector<8xf32> to vector<8x1xf32>
    %c0_90 = arith.constant 0 : index
    %c0_91 = arith.constant 0 : index
    %366 = vector.load %arg8[%c0_90, %c0_91] : memref<1x1xf32, #tpu.memory_space<vmem>>, vector<1x1xf32>
    %367 = vector.broadcast %366 : vector<1x1xf32> to vector<8x1xf32>
    %368 = arith.addf %365, %367 : vector<8x1xf32>
    %369 = arith.negf %368 : vector<8x1xf32>
    %370 = math.exp %369 : vector<8x1xf32>
    %cst_92 = arith.constant 1.000000e+00 : f32
    %371 = vector.broadcast %cst_92 : f32 to vector<8x1xf32>
    %372 = arith.addf %371, %370 : vector<8x1xf32>
    %373 = arith.divf %371, %372 : vector<8x1xf32>
    %c0_93 = arith.constant 0 : index
    %c0_94 = arith.constant 0 : index
    %374 = vector.load %arg9[%c0_93, %c0_94] : memref<8x1xf32, #tpu.memory_space<vmem>>, vector<8x1xf32>
    tpu.vector_store %arg9[%c0_93, %c0_94], %373 {strides = array<i32>} : memref<8x1xf32, #tpu.memory_space<vmem>>, vector<8x1xf32>,
    return
  }
  func.func @transform_0(%arg0: i32) -> (i32, i32) {
    %c0_i32 = arith.constant 0 : i32
    %c0_i32_0 = arith.constant 0 : i32
    %c0_i32_1 = arith.constant 0 : i32
    return %c0_i32, %c0_i32_0 : i32, i32
  }
  func.func @transform_1(%arg0: i32) -> (i32, i32) {
    %c0_i32 = arith.constant 0 : i32
    %c0_i32_0 = arith.constant 0 : i32
    %c0_i32_1 = arith.constant 0 : i32
    return %c0_i32, %c0_i32_0 : i32, i32
  }
  func.func @transform_2(%arg0: i32) -> (i32, i32) {
    %c0_i32 = arith.constant 0 : i32
    %c0_i32_0 = arith.constant 0 : i32
    %c0_i32_1 = arith.constant 0 : i32
    return %c0_i32, %c0_i32_0 : i32, i32
  }
  func.func @transform_3(%arg0: i32) -> (i32, i32) {
    %c0_i32 = arith.constant 0 : i32
    %c0_i32_0 = arith.constant 0 : i32
    %c0_i32_1 = arith.constant 0 : i32
    return %c0_i32, %c0_i32_0 : i32, i32
  }
  func.func @transform_4(%arg0: i32) -> (i32, i32) {
    %c0_i32 = arith.constant 0 : i32
    %c0_i32_0 = arith.constant 0 : i32
    %c0_i32_1 = arith.constant 0 : i32
    return %c0_i32, %c0_i32_0 : i32, i32
  }
  func.func @transform_5(%arg0: i32) -> (i32, i32) {
    %c0_i32 = arith.constant 0 : i32
    %c0_i32_0 = arith.constant 0 : i32
    %c0_i32_1 = arith.constant 0 : i32
    return %c0_i32, %c0_i32_0 : i32, i32
  }
  func.func @transform_6(%arg0: i32) -> (i32, i32) {
    %c0_i32 = arith.constant 0 : i32
    %c0_i32_0 = arith.constant 0 : i32
    %c0_i32_1 = arith.constant 0 : i32
    return %c0_i32, %c0_i32_0 : i32, i32
  }
  func.func @transform_7(%arg0: i32) -> (i32, i32) {
    %c0_i32 = arith.constant 0 : i32
    %c0_i32_0 = arith.constant 0 : i32
    %c0_i32_1 = arith.constant 0 : i32
    return %c0_i32, %c0_i32_0 : i32, i32
  }
  func.func @transform_8(%arg0: i32) -> (i32, i32) {
    %c0_i32 = arith.constant 0 : i32
    %c0_i32_0 = arith.constant 0 : i32
    %c0_i32_1 = arith.constant 0 : i32
    return %c0_i32, %c0_i32_0 : i32, i32
  }
}

</mosaic_0001>

<bundles_post_ra>
// kernel: lstm_model_forward.1
= control target key start
LH: loop header
LB: loop body
LE: loop exit
PB: predicated region body
PF: predicated region fallthrough
CT: control target
= control target key end

     0   :  { %v2346_v0 = vmov 0.0   ;;  %vm2347_vm0 = vmmov 0   ;;  %vm66_vm1 = vcmask 130048   ;;  %v31_v9 = vlaneseq  ;;  %s2348_s21 = smov 64   ;;  %s2349_s22 = smov 32   ;;  %s2993_s1 = inlined_call_operand.vmem [shape: f32[16,128], index: 1, kind: input, shape index: {}]   ;;  %s2994_s2 = inlined_call_operand.vmem [shape: f32[32,128], index: 2, kind: input, shape index: {}]   ;;  %s2995_s0 = inlined_call_operand.vmem [shape: f32[64,16], index: 0, kind: input, shape index: {}]   ;;  %s2996_s3 = inlined_call_operand.vmem [shape: f32[1,128], index: 3, kind: input, shape index: {}]   ;;  %s2997_s4 = inlined_call_operand.vmem [shape: f32[64,128], index: 4, kind: input, shape index: {}]   ;;  %s2998_s5 = inlined_call_operand.vmem [shape: f32[1,128], index: 5, kind: input, shape index: {}]   ;;  %s2999_s6 = inlined_call_operand.vmem [shape: f32[1,32], index: 6, kind: input, shape index: {}]   ;;  %s3000_s7 = inlined_call_operand.<no memory space> [shape: f32[1,1], index: 7, kind: input, shape index: {}]   ;;  %s3001_s8 = inlined_call_operand.vmem [shape: f32[8,1], index: 8, kind: output, shape index: {}]  }
   0x1   :  { %2028 = vmatprep.subr.mxu1 %v2346_v0  ;;  %v58_v1 = vld [vmem:[%s2993_s1 + $0x8] sm:$0xff]  ;;  %v2403_v2 = vld [vmem:[%s2994_s2 + $0x18] sm:$0xff]  ;;  %v57_v3 = vld [vmem:[%s2993_s1] sm:$0xff]  ;;  %2036 = vmatprep.mubr.msk.f32.mxu1 %vm2347_vm0, %v2346_v0  ;;  %vm205_vm5 = vcmask 261120   ;;  %vm411_vm6 = vcmask 523264   ;;  %s2350_s16 = smov 96   ;;  %v13_v17 = vstv %s3000_s7 }
   0x2   :  { %2012 = vmatprep.subr.mxu0 %v58_v1  ;;  %2029 = vmatpush3.msra.mxu1 %v2403_v2  ;;  %v2414_v4 = vld [vmem:[%s2994_s2 + $0x10] sm:$0xff]  ;;  %v49_v5 = vld [vmem:[%s2995_s0] sm:$0xff]  ;;  %v50_v6 = vld [vmem:[%s2995_s0 + $0x8] sm:$0xff]  ;;  %v32_v10 = vand.u32 127, %v31_v9  ;;  %14 = vst [vmem:[#allocation3] sm:$0x1] %v13_v17 }
   0x3   :  { %2013 = vmatpush3.msra.mxu0 %v58_v1  ;;  %2030 = vmatprep.subr.mxu1 %v2346_v0  ;;  %v2427_v7 = vld [vmem:[%s2994_s2 + $0x8] sm:$0xff]  ;;  %v2435_v8 = vld [vmem:[%s2994_s2] sm:$0xff]  ;;  %v51_v30 = vld [vmem:[%s2995_s0 + $0x10] sm:$0xff]  ;;  %vm1856_vm7 = vcmask 7168  }
   0x4   :  { %2014 = vmatprep.subr.mxu0 %v57_v3  ;;  %2031 = vmatpush3.msra.mxu1 %v2414_v4  ;;  %v2458_v12 = vld [vmem:[%s2996_s3] ss:$0 sm:$0xff]  ;;  %vm33_vm2 = vcmp.ge.s32.totalorder %v32_v10, 64  ;;  %vm34_vm3 = vcmp.lt.s32.totalorder %v32_v10, 96  ;;  %v52_v31 = vld [vmem:[%s2995_s0 + $0x18] sm:$0xff]  ;;  %v2489_v33 = vld [vmem:[%s2997_s4 + $0x30] sm:$0xff] }
   0x5   :  { %2015 = vmatpush3.msra.mxu0 %v57_v3  ;;  %2016 = vmatprep.mubr.msk.f32.mxu0 %vm66_vm1, %v49_v5  ;;  %vm2461_vm4 = vmand %vm33_vm2, %vm34_vm3  ;;  %v2483_v32 = vld [vmem:[%s2997_s4 + $0x38] sm:$0xff]  ;;  %v53_v34 = vld [vmem:[%s2995_s0 + $0x20] sm:$0xff] }
   0x6   :  { %2032 = vmatprep.subr.mxu1 %v2346_v0  ;;  %2017 = vmatmul.mubr.msk.f32.vlgmr.msra.gmra.mxu0 %vm66_vm1, %v50_v6  ;;  %v2500_v35 = vld [vmem:[%s2997_s4 + $0x28] sm:$0xff]  ;;  %v2511_v37 = vld [vmem:[%s2997_s4 + $0x20] sm:$0xff]  ;;  %v55_v38 = vld [vmem:[%s2995_s0 + $0x30] sm:$0xff] }
   0x7   :  { %2033 = vmatpush3.msra.mxu1 %v2427_v7  ;;  %2050 = vmatprep.subr.mxu0 %v2346_v0  ;;  %v54_v36 = vld [vmem:[%s2995_s0 + $0x28] sm:$0xff]  ;;  %v2522_v39 = vld [vmem:[%s2997_s4 + $0x18] sm:$0xff]  ;;  %v2530_v40 = vld [vmem:[%s2997_s4 + $0x10] sm:$0xff] }
   0x8   :  { %2034 = vmatprep.subr.mxu1 %v2346_v0  ;;  %2019 = vmatprep.mubr.msk.f32.mxu0 %vm66_vm1, %v51_v30  ;;  %v56_v42 = vld [vmem:[%s2995_s0 + $0x38] sm:$0xff]  ;;  %v2541_v43 = vld [vmem:[%s2997_s4 + $0x8] sm:$0xff]  ;;  %v2553_v44 = vld [vmem:[%s2997_s4] sm:$0xff] }
   0x9   :  { %2035 = vmatpush3.msra.mxu1 %v2435_v8  ;;  %2051 = vmatpush3.msra.mxu0 %v2483_v32  ;;  %v2606_v56 = vld [vmem:[%s2998_s5] ss:$0 sm:$0xff] }
   0xa   :  { %2037 = vmatmul.mubr.f32.vlgmr.msra.gmra.mxu1 %v2346_v0  ;;  %2039 = vmatprep.subr.mxu1 %v2346_v0 }
   0xb   :  { %2040 = vmatpush3.msra.mxu1 %v2403_v2  ;;  %2047 = vmatprep.mubr.msk.f32.mxu1 %vm2347_vm0, %v2346_v0 }
   0xc   :  { %2041 = vmatprep.subr.mxu1 %v2346_v0  ;;  %2052 = vmatprep.subr.mxu0 %v2346_v0 }
   0xd   :  { %2042 = vmatpush3.msra.mxu1 %v2414_v4  ;;  %2020 = vmatmul.mubr.msk.f32.gmra.mxu0 %vm66_vm1, %v52_v31 }
   0xe   :  { %2043 = vmatprep.subr.mxu1 %v2346_v0  ;;  %2053 = vmatpush3.msra.mxu0 %v2489_v33 }
   0xf   :  { %2044 = vmatpush3.msra.mxu1 %v2427_v7  ;;  %2022 = vmatprep.mubr.msk.f32.mxu0 %vm66_vm1, %v53_v34 }
  0x10   :  { %2045 = vmatprep.subr.mxu1 %v2346_v0  ;;  %2054 = vmatprep.subr.mxu0 %v2346_v0 }
  0x11   :  { %2046 = vmatpush3.msra.mxu1 %v2435_v8  ;;  %2055 = vmatpush3.msra.mxu0 %v2500_v35 }
  0x12   :  { %2069 = vmatprep.subr.mxu1 %v2346_v0  ;;  %2056 = vmatprep.subr.mxu0 %v2346_v0 }
  0x13   :  { %2023 = vmatmul.mubr.msk.f32.gmra.mxu0 %vm66_vm1, %v54_v36 }
  0x14   :  { %2057 = vmatpush3.msra.mxu0 %v2511_v37  ;;  %2025 = vmatprep.mubr.msk.f32.mxu0 %vm66_vm1, %v55_v38 }
  0x15   :  { %2058 = vmatprep.subr.mxu0 %v2346_v0 }
  0x16   :  { %2059 = vmatpush3.msra.mxu0 %v2522_v39 }
  0x17   :  { %2060 = vmatprep.subr.mxu0 %v2346_v0  ;;  %2026 = vmatmul.mubr.msk.f32.gmra.mxu0 %vm66_vm1, %v56_v42 }
  0x18   :  { %2061 = vmatpush3.msra.mxu0 %v2530_v40  ;;  %2066 = vmatprep.mubr.msk.f32.mxu0 %vm2347_vm0, %v2346_v0 }
  0x19   :  { %2062 = vmatprep.subr.mxu0 %v2346_v0 }
  0x1a   :  { %2063 = vmatpush3.msra.mxu0 %v2541_v43 }
  0x1b   :  { %2064 = vmatprep.subr.mxu0 %v2346_v0 }
  0x1c   :  { %2065 = vmatpush3.msra.mxu0 %v2553_v44 }
  0x1d   :  { %2080 = vmatprep.subr.mxu0 %v2346_v0 }
  0xc6   :  { %v2453_v11 = vpop.f32.mrf.mxu0 }
  0xc7   :  { %v163_v55 = vadd.f32 %v2453_v11, %v2458_v12 }
  0xc8   :  { %v157_v13 = vpop.f32.mrf.mxu0 }
  0xc9   :  { %v158_v14 = vadd.f32 %v2458_v12, %v157_v13 }
  0xca   :  { %v275_v15 = vpop.f32.mrf.mxu1 }
  0xcb   :  { %v279_v16 = vadd.f32 %v275_v15, %v158_v14 }
  0xcc   :  { %v2038_v18 = vpop.f32.mrf.mxu1 }
  0xcd   :  { %v280_v19 = vmul.f32 0.5, %v279_v16  ;;  %v2589_v49 = vpop.f32.mrf.mxu0 }
  0xcf   :  { %v281_v20 = vsel %vm2461_vm4, %v279_v16, %v280_v19  ;;  %v2591_v50 = vpop.f32.mrf.mxu0 }
  0xd0   :  { %2273 = vtanh.f32 %v281_v20 }
  0xd3   :  { %v2593_v51 = vpop.f32.mrf.mxu0 }
  0xd5   :  { %v2595_v52 = vpop.f32.mrf.mxu0 }
  0xd7   :  { %v2597_v53 = vpop.f32.mrf.mxu0 }
  0xd9   :  { %v2599_v54 = vpop.f32.mrf.mxu0 }
  0xdd   :  { %v2274_v21 = vpop.eup %2273 }
  0xde   :  { %v283_v22 = vadd.f32 1.0, %v2274_v21 }
  0xe0   :  { %v284_v23 = vmul.f32 0.5, %v283_v22 }
  0xe2   :  { %v285_v24 = vsel %vm2461_vm4, %v2274_v21, %v284_v23 }
  0xe3   :  { %288 = vrot.lane.b32.xlu0 %v285_v24, %s2348_s21  ;;  %v286_v27 = vmul.f32 0.0, %v285_v24 }
 0x155   :  { %v289_v25 = vpop.permute.xlu0 %288 }
 0x156   :  { %v291_v26 = vmul.f32 %v289_v25, %v285_v24 }
 0x158   :  { %293 = vrot.lane.b32.xlu0 %v291_v26, %s2349_s22 }
 0x1ca   :  { %v294_v28 = vpop.permute.xlu0 %293 }
 0x1cb   :  { %v2471_v29 = vadd.f32 %v294_v28, %v286_v27 }
 0x1cd   :  { %2275 = vtanh.f32 %v2471_v29 }
 0x1da   :  { %v2276_v41 = vpop.eup %2275 }
 0x1db   :  { %299 = vrot.lane.b32.xlu1 %v2276_v41, %s2348_s21 }
 0x24d   :  { %v300_v45 = vpop.permute.xlu1 %299 }
 0x24e   :  { %v302_v46 = vmul.f32 %v300_v45, %v285_v24  ;;  %v168_v45 = vadd.f32 %v2458_v12, %v2591_v50 }
 0x250   :  { %305 = vrot.lane.b32.xlu1 %v302_v46, %s2349_s22 }
 0x2c2   :  { %v306_v47 = vpop.permute.xlu1 %305 }
 0x2c3   :  { %v404_v48 = vsel %vm205_vm5, %v306_v47, 0.0  ;;  %2048 = vmatmul.mubr.msk.f32.vlgmr.msra.gmra.mxu1 %vm205_vm5, %v306_v47 }
 0x2c4   :  { %2067 = vmatmul.mubr.msk.f32.vlgmr.msra.gmra.mxu0 %vm411_vm6, %v404_v48  ;;  %2070 = vmatpush3.msra.mxu1 %v2403_v2 }
 0x2c5   :  { %2081 = vmatpush3.msra.mxu0 %v2483_v32  ;;  %2071 = vmatprep.subr.mxu1 %v2346_v0 }
 0x2c6   :  { %2082 = vmatprep.subr.mxu0 %v2346_v0  ;;  %2072 = vmatpush3.msra.mxu1 %v2414_v4 }
 0x2c7   :  { %2083 = vmatpush3.msra.mxu0 %v2489_v33  ;;  %2073 = vmatprep.subr.mxu1 %v2346_v0 }
 0x2c8   :  { %2084 = vmatprep.subr.mxu0 %v2346_v0  ;;  %2074 = vmatpush3.msra.mxu1 %v2427_v7 }
 0x2c9   :  { %2085 = vmatpush3.msra.mxu0 %v2500_v35  ;;  %2075 = vmatprep.subr.mxu1 %v2346_v0 }
 0x2ca   :  { %2086 = vmatprep.subr.mxu0 %v2346_v0  ;;  %2076 = vmatpush3.msra.mxu1 %v2435_v8 }
 0x2cb   :  { %2087 = vmatpush3.msra.mxu0 %v2511_v37  ;;  %2077 = vmatprep.mubr.msk.f32.mxu1 %vm2347_vm0, %v2346_v0 }
 0x2cc   :  { %2088 = vmatprep.subr.mxu0 %v2346_v0  ;;  %2096 = vmatprep.mubr.msk.f32.mxu0 %vm2347_vm0, %v2346_v0 }
 0x2cd   :  { %2089 = vmatpush3.msra.mxu0 %v2522_v39  ;;  %2099 = vmatprep.subr.mxu1 %v2346_v0 }
 0x2ce   :  { %2090 = vmatprep.subr.mxu0 %v2346_v0 }
 0x2cf   :  { %2091 = vmatpush3.msra.mxu0 %v2530_v40 }
 0x2d0   :  { %2092 = vmatprep.subr.mxu0 %v2346_v0 }
 0x2d1   :  { %2093 = vmatpush3.msra.mxu0 %v2541_v43 }
 0x2d2   :  { %2094 = vmatprep.subr.mxu0 %v2346_v0 }
 0x2d3   :  { %2095 = vmatpush3.msra.mxu0 %v2553_v44 }
 0x2d4   :  { %2129 = vmatprep.subr.mxu0 %v2346_v0 }
 0x383   :  { %v375_v57 = vpop.f32.mrf.mxu1 }
 0x384   :  { %v379_v58 = vadd.f32 %v375_v57, %v163_v55  ;;  %v481_v59 = vpop.f32.mrf.mxu0 }
 0x385   :  { %v482_v60 = vadd.f32 %v2606_v56, %v481_v59  ;;  %v2049_v61 = vpop.f32.mrf.mxu1 }
 0x386   :  { %v380_v62 = vmul.f32 0.5, %v379_v58  ;;  %v2068_v63 = vpop.f32.mrf.mxu0 }
 0x387   :  { %v485_v1 = vmul.f32 0.5, %v482_v60 }
 0x388   :  { %v381_v3 = vsel %vm2461_vm4, %v379_v58, %v380_v62 }
 0x389   :  { %2277 = vtanh.f32 %v381_v3  ;;  %v486_v5 = vsel %vm2461_vm4, %v482_v60, %v485_v1 }
 0x38a   :  { %2279 = vtanh.f32 %v486_v5 }
 0x396   :  { %v2278_v6 = vpop.eup %2277 }
 0x397   :  { %v2280_v9 = vpop.eup %2279  ;;  %v383_v10 = vadd.f32 1.0, %v2278_v6 }
 0x398   :  { %v488_v11 = vadd.f32 1.0, %v2280_v9 }
 0x399   :  { %v384_v13 = vmul.f32 0.5, %v383_v10 }
 0x39a   :  { %v489_v14 = vmul.f32 0.5, %v488_v11 }
 0x39b   :  { %v385_v15 = vsel %vm2461_vm4, %v2278_v6, %v384_v13 }
 0x39c   :  { %388 = vrot.lane.b32.xlu0 %v385_v15, %s2348_s21  ;;  %v490_v16 = vsel %vm2461_vm4, %v2280_v9, %v489_v14  ;;  %v386_v22 = vmul.f32 %v385_v15, %v2471_v29 }
 0x39d   :  { %493 = vrot.lane.b32.xlu1 %v490_v16, %s2348_s21  ;;  %v491_v24 = vmul.f32 0.0, %v490_v16 }
 0x40e   :  { %v389_v18 = vpop.permute.xlu0 %388 }
 0x40f   :  { %v391_v19 = vmul.f32 %v389_v18, %v385_v15  ;;  %v494_v20 = vpop.permute.xlu1 %493 }
 0x410   :  { %v496_v21 = vmul.f32 %v494_v20, %v490_v16 }
 0x411   :  { %393 = vrot.lane.b32.xlu0 %v391_v19, %s2349_s22 }
 0x412   :  { %498 = vrot.lane.b32.xlu1 %v496_v21, %s2349_s22 }
 0x483   :  { %v394_v23 = vpop.permute.xlu0 %393 }
 0x484   :  { %v2622_v25 = vadd.f32 %v394_v23, %v386_v22  ;;  %v499_v26 = vpop.permute.xlu1 %498 }
 0x485   :  { %v2624_v27 = vadd.f32 %v499_v26, %v491_v24 }
 0x486   :  { %2281 = vtanh.f32 %v2622_v25 }
 0x487   :  { %2283 = vtanh.f32 %v2624_v27 }
 0x493   :  { %v2282_v28 = vpop.eup %2281 }
 0x494   :  { %v2284_v30 = vpop.eup %2283  ;;  %399 = vrot.lane.b32.xlu0 %v2282_v28, %s2348_s21 }
 0x495   :  { %504 = vrot.lane.b32.xlu1 %v2284_v30, %s2348_s21 }
 0x506   :  { %v400_v31 = vpop.permute.xlu0 %399 }
 0x507   :  { %v402_v34 = vmul.f32 %v400_v31, %v385_v15  ;;  %v505_v29 = vpop.permute.xlu1 %504 }
 0x508   :  { %v507_v36 = vmul.f32 %v505_v29, %v490_v16  ;;  %v173_v29 = vadd.f32 %v2589_v49, %v2458_v12 }
 0x509   :  { %510 = vrot.lane.b32.xlu0 %v402_v34, %s2349_s22 }
 0x50a   :  { %610 = vrot.lane.b32.xlu1 %v507_v36, %s2348_s21 }
 0x57b   :  { %v511_v38 = vpop.permute.xlu0 %510 }
 0x57c   :  { %2078 = vmatmul.mubr.msk.f32.vlgmr.msra.gmra.mxu1 %vm205_vm5, %v511_v38  ;;  %v611_v41 = vpop.permute.xlu1 %610 }
 0x57d   :  { %v613_v42 = vsel %vm205_vm5, %v511_v38, %v611_v41  ;;  %2100 = vmatpush3.msra.mxu1 %v2403_v2  ;;  %2107 = vmatprep.mubr.msk.f32.mxu1 %vm2347_vm0, %v2346_v0 }
 0x57e   :  { %2097 = vmatmul.mubr.msk.f32.vlgmr.msra.gmra.mxu0 %vm411_vm6, %v613_v42  ;;  %2101 = vmatprep.subr.mxu1 %v2346_v0 }
 0x57f   :  { %2102 = vmatpush3.msra.mxu1 %v2414_v4  ;;  %2130 = vmatpush3.msra.mxu0 %v2403_v2 }
 0x580   :  { %2103 = vmatprep.subr.mxu1 %v2346_v0  ;;  %2131 = vmatprep.subr.mxu0 %v2346_v0 }
 0x581   :  { %2104 = vmatpush3.msra.mxu1 %v2427_v7  ;;  %2132 = vmatpush3.msra.mxu0 %v2414_v4 }
 0x582   :  { %2105 = vmatprep.subr.mxu1 %v2346_v0  ;;  %2133 = vmatprep.subr.mxu0 %v2346_v0 }
 0x583   :  { %2106 = vmatpush3.msra.mxu1 %v2435_v8  ;;  %2134 = vmatpush3.msra.mxu0 %v2427_v7 }
 0x584   :  { %2110 = vmatprep.subr.mxu1 %v2346_v0  ;;  %2135 = vmatprep.subr.mxu0 %v2346_v0 }
 0x585   :  { %2136 = vmatpush3.msra.mxu0 %v2435_v8  ;;  %2137 = vmatprep.mubr.msk.f32.mxu0 %vm2347_vm0, %v2346_v0 }
 0x586   :  { %2140 = vmatprep.subr.mxu0 %v2346_v0 }
 0x63c   :  { %v580_v46 = vpop.f32.mrf.mxu1 }
 0x63d   :  { %v584_v47 = vadd.f32 %v580_v46, %v168_v45 }
 0x63e   :  { %v2079_v48 = vpop.f32.mrf.mxu1  ;;  %v683_v55 = vpop.f32.mrf.mxu0 }
 0x63f   :  { %v585_v57 = vmul.f32 0.5, %v584_v47  ;;  %v684_v58 = vadd.f32 %v2606_v56, %v683_v55 }
 0x640   :  { %v2098_v59 = vpop.f32.mrf.mxu0 }
 0x641   :  { %v586_v60 = vsel %vm2461_vm4, %v584_v47, %v585_v57  ;;  %v687_v61 = vmul.f32 0.5, %v684_v58 }
 0x642   :  { %2285 = vtanh.f32 %v586_v60 }
 0x643   :  { %v688_v62 = vsel %vm2461_vm4, %v684_v58, %v687_v61 }
 0x644   :  { %2287 = vtanh.f32 %v688_v62 }
 0x64f   :  { %v2286_v63 = vpop.eup %2285 }
 0x650   :  { %v588_v1 = vadd.f32 1.0, %v2286_v63 }
 0x651   :  { %v2288_v50 = vpop.eup %2287 }
 0x652   :  { %v589_v3 = vmul.f32 0.5, %v588_v1  ;;  %v690_v5 = vadd.f32 1.0, %v2288_v50 }
 0x654   :  { %v590_v6 = vsel %vm2461_vm4, %v2286_v63, %v589_v3  ;;  %v691_v9 = vmul.f32 0.5, %v690_v5 }
 0x655   :  { %593 = vrot.lane.b32.xlu0 %v590_v6, %s2348_s21  ;;  %v591_v16 = vmul.f32 %v590_v6, %v2622_v25 }
 0x656   :  { %v692_v10 = vsel %vm2461_vm4, %v2288_v50, %v691_v9 }
 0x657   :  { %695 = vrot.lane.b32.xlu1 %v692_v10, %s2348_s21  ;;  %v693_v20 = vmul.f32 %v692_v10, %v2624_v27 }
 0x6c7   :  { %v594_v11 = vpop.permute.xlu0 %593 }
 0x6c8   :  { %v596_v13 = vmul.f32 %v594_v11, %v590_v6 }
 0x6c9   :  { %v696_v14 = vpop.permute.xlu1 %695 }
 0x6ca   :  { %v698_v15 = vmul.f32 %v696_v14, %v692_v10  ;;  %598 = vrot.lane.b32.xlu0 %v596_v13, %s2349_s22 }
 0x6cc   :  { %700 = vrot.lane.b32.xlu1 %v698_v15, %s2349_s22 }
 0x73c   :  { %v599_v18 = vpop.permute.xlu0 %598 }
 0x73d   :  { %v2671_v19 = vadd.f32 %v599_v18, %v591_v16 }
 0x73e   :  { %v701_v21 = vpop.permute.xlu1 %700 }
 0x73f   :  { %2289 = vtanh.f32 %v2671_v19  ;;  %v2675_v22 = vadd.f32 %v701_v21, %v693_v20 }
 0x741   :  { %2291 = vtanh.f32 %v2675_v22 }
 0x74c   :  { %v2290_v23 = vpop.eup %2289 }
 0x74d   :  { %604 = vrot.lane.b32.xlu0 %v2290_v23, %s2348_s21 }
 0x74e   :  { %v2292_v24 = vpop.eup %2291 }
 0x74f   :  { %706 = vrot.lane.b32.xlu1 %v2292_v24, %s2348_s21 }
 0x7bf   :  { %v605_v26 = vpop.permute.xlu0 %604 }
 0x7c0   :  { %v607_v25 = vmul.f32 %v605_v26, %v590_v6 }
 0x7c1   :  { %v707_v28 = vpop.permute.xlu1 %706 }
 0x7c2   :  { %v709_v30 = vmul.f32 %v707_v28, %v692_v10  ;;  %712 = vrot.lane.b32.xlu0 %v607_v25, %s2349_s22  ;;  %v178_v25 = vadd.f32 %v2458_v12, %v2595_v52 }
 0x7c4   :  { %812 = vrot.lane.b32.xlu1 %v709_v30, %s2348_s21 }
 0x834   :  { %v713_v27 = vpop.permute.xlu0 %712 }
 0x835   :  { %2108 = vmatmul.mubr.msk.f32.vlgmr.msra.gmra.mxu1 %vm205_vm5, %v713_v27 }
 0x836   :  { %2111 = vmatpush3.msra.mxu1 %v2483_v32  ;;  %2126 = vmatprep.mubr.msk.f32.mxu1 %vm2347_vm0, %v2346_v0  ;;  %v813_v31 = vpop.permute.xlu1 %812 }
 0x837   :  { %2112 = vmatprep.subr.mxu1 %v2346_v0  ;;  %v815_v34 = vsel %vm205_vm5, %v713_v27, %v813_v31 }
 0x838   :  { %2113 = vmatpush3.msra.mxu1 %v2489_v33 }
 0x839   :  { %2114 = vmatprep.subr.mxu1 %v2346_v0 }
 0x83a   :  { %2115 = vmatpush3.msra.mxu1 %v2500_v35 }
 0x83b   :  { %2116 = vmatprep.subr.mxu1 %v2346_v0 }
 0x83c   :  { %2117 = vmatpush3.msra.mxu1 %v2511_v37 }
 0x83d   :  { %2118 = vmatprep.subr.mxu1 %v2346_v0 }
 0x83e   :  { %2119 = vmatpush3.msra.mxu1 %v2522_v39 }
 0x83f   :  { %2120 = vmatprep.subr.mxu1 %v2346_v0 }
 0x840   :  { %2121 = vmatpush3.msra.mxu1 %v2530_v40 }
 0x841   :  { %2122 = vmatprep.subr.mxu1 %v2346_v0 }
 0x842   :  { %2123 = vmatpush3.msra.mxu1 %v2541_v43 }
 0x843   :  { %2124 = vmatprep.subr.mxu1 %v2346_v0 }
 0x844   :  { %2125 = vmatpush3.msra.mxu1 %v2553_v44 }
 0x845   :  { %2127 = vmatmul.mubr.msk.f32.vlgmr.msra.gmra.mxu1 %vm411_vm6, %v815_v34  ;;  %2159 = vmatprep.subr.mxu1 %v2346_v0 }
 0x846   :  { %2160 = vmatpush3.msra.mxu1 %v2403_v2  ;;  %2167 = vmatprep.mubr.msk.f32.mxu1 %vm2347_vm0, %v2346_v0 }
 0x847   :  { %2161 = vmatprep.subr.mxu1 %v2346_v0 }
 0x848   :  { %2162 = vmatpush3.msra.mxu1 %v2414_v4 }
 0x849   :  { %2163 = vmatprep.subr.mxu1 %v2346_v0 }
 0x84a   :  { %2164 = vmatpush3.msra.mxu1 %v2427_v7 }
 0x84b   :  { %2165 = vmatprep.subr.mxu1 %v2346_v0 }
 0x84c   :  { %2166 = vmatpush3.msra.mxu1 %v2435_v8 }
 0x84d   :  { %2170 = vmatprep.subr.mxu1 %v2346_v0 }
 0x8f5   :  { %v782_v36 = vpop.f32.mrf.mxu1 }
 0x8f6   :  { %v786_v38 = vadd.f32 %v782_v36, %v173_v29 }
 0x8f7   :  { %v2109_v41 = vpop.f32.mrf.mxu1 }
 0x8f8   :  { %v787_v42 = vmul.f32 0.5, %v786_v38 }
 0x8fa   :  { %v788_v45 = vsel %vm2461_vm4, %v786_v38, %v787_v42 }
 0x8fb   :  { %2293 = vtanh.f32 %v788_v45 }
 0x905   :  { %v885_v46 = vpop.f32.mrf.mxu1 }
 0x906   :  { %v886_v47 = vadd.f32 %v2606_v56, %v885_v46 }
 0x907   :  { %v2128_v48 = vpop.f32.mrf.mxu1 }
 0x908   :  { %v2294_v55 = vpop.eup %2293  ;;  %v889_v57 = vmul.f32 0.5, %v886_v47 }
 0x909   :  { %v790_v58 = vadd.f32 1.0, %v2294_v55 }
 0x90a   :  { %v890_v59 = vsel %vm2461_vm4, %v886_v47, %v889_v57 }
 0x90b   :  { %2295 = vtanh.f32 %v890_v59  ;;  %v791_v49 = vmul.f32 0.5, %v790_v58 }
 0x90d   :  { %v792_v60 = vsel %vm2461_vm4, %v2294_v55, %v791_v49 }
 0x90e   :  { %795 = vrot.lane.b32.xlu0 %v792_v60, %s2348_s21  ;;  %v793_v9 = vmul.f32 %v792_v60, %v2671_v19 }
 0x918   :  { %v2296_v61 = vpop.eup %2295 }
 0x919   :  { %v892_v62 = vadd.f32 1.0, %v2296_v61 }
 0x91b   :  { %v893_v63 = vmul.f32 0.5, %v892_v62 }
 0x91d   :  { %v894_v1 = vsel %vm2461_vm4, %v2296_v61, %v893_v63 }
 0x91e   :  { %897 = vrot.lane.b32.xlu1 %v894_v1, %s2348_s21  ;;  %v895_v13 = vmul.f32 %v894_v1, %v2675_v22 }
 0x980   :  { %v796_v50 = vpop.permute.xlu0 %795 }
 0x981   :  { %v798_v3 = vmul.f32 %v796_v50, %v792_v60 }
 0x983   :  { %800 = vrot.lane.b32.xlu0 %v798_v3, %s2349_s22 }
 0x990   :  { %v898_v5 = vpop.permute.xlu1 %897 }
 0x991   :  { %v900_v6 = vmul.f32 %v898_v5, %v894_v1 }
 0x993   :  { %902 = vrot.lane.b32.xlu1 %v900_v6, %s2349_s22 }
 0x9f5   :  { %v801_v10 = vpop.permute.xlu0 %800 }
 0x9f6   :  { %v2729_v11 = vadd.f32 %v801_v10, %v793_v9 }
 0x9f8   :  { %2297 = vtanh.f32 %v2729_v11 }
 0xa05   :  { %v2298_v14 = vpop.eup %2297  ;;  %v903_v15 = vpop.permute.xlu1 %902 }
 0xa06   :  { %v2733_v16 = vadd.f32 %v903_v15, %v895_v13  ;;  %806 = vrot.lane.b32.xlu0 %v2298_v14, %s2348_s21 }
 0xa08   :  { %2299 = vtanh.f32 %v2733_v16 }
 0xa15   :  { %v2300_v18 = vpop.eup %2299 }
 0xa16   :  { %908 = vrot.lane.b32.xlu1 %v2300_v18, %s2348_s21 }
 0xa78   :  { %v807_v20 = vpop.permute.xlu0 %806 }
 0xa79   :  { %v809_v19 = vmul.f32 %v807_v20, %v792_v60 }
 0xa7b   :  { %914 = vrot.lane.b32.xlu0 %v809_v19, %s2349_s22 }
 0xa88   :  { %v909_v21 = vpop.permute.xlu1 %908 }
 0xa89   :  { %v911_v23 = vmul.f32 %v909_v21, %v894_v1 }
 0xa8b   :  { %1014 = vrot.lane.b32.xlu1 %v911_v23, %s2348_s21 }
 0xaed   :  { %v915_v22 = vpop.permute.xlu0 %914 }
 0xaee   :  { %2138 = vmatmul.mubr.msk.f32.vlgmr.msra.gmra.mxu0 %vm205_vm5, %v915_v22 }
 0xaef   :  { %2141 = vmatpush3.msra.mxu0 %v2483_v32  ;;  %2156 = vmatprep.mubr.msk.f32.mxu0 %vm2347_vm0, %v2346_v0 }
 0xaf0   :  { %2142 = vmatprep.subr.mxu0 %v2346_v0 }
 0xaf1   :  { %2143 = vmatpush3.msra.mxu0 %v2489_v33 }
 0xaf2   :  { %2144 = vmatprep.subr.mxu0 %v2346_v0 }
 0xaf3   :  { %2145 = vmatpush3.msra.mxu0 %v2500_v35 }
 0xaf4   :  { %2146 = vmatprep.subr.mxu0 %v2346_v0 }
 0xaf5   :  { %2147 = vmatpush3.msra.mxu0 %v2511_v37 }
 0xaf6   :  { %2148 = vmatprep.subr.mxu0 %v2346_v0 }
 0xaf7   :  { %2149 = vmatpush3.msra.mxu0 %v2522_v39 }
 0xaf8   :  { %2150 = vmatprep.subr.mxu0 %v2346_v0 }
 0xaf9   :  { %2151 = vmatpush3.msra.mxu0 %v2530_v40 }
 0xafa   :  { %2152 = vmatprep.subr.mxu0 %v2346_v0 }
 0xafb   :  { %2153 = vmatpush3.msra.mxu0 %v2541_v43 }
 0xafc   :  { %2154 = vmatprep.subr.mxu0 %v2346_v0 }
 0xafd   :  { %v1015_v24 = vpop.permute.xlu1 %1014  ;;  %2155 = vmatpush3.msra.mxu0 %v2553_v44 }
 0xafe   :  { %v1017_v26 = vsel %vm205_vm5, %v915_v22, %v1015_v24  ;;  %2189 = vmatprep.subr.mxu0 %v2346_v0 }
 0xaff   :  { %2157 = vmatmul.mubr.msk.f32.vlgmr.msra.gmra.mxu0 %vm411_vm6, %v1017_v26 }
 0xb00   :  { %2190 = vmatpush3.msra.mxu0 %v2403_v2  ;;  %2197 = vmatprep.mubr.msk.f32.mxu0 %vm2347_vm0, %v2346_v0 }
 0xb01   :  { %2191 = vmatprep.subr.mxu0 %v2346_v0 }
 0xb02   :  { %2192 = vmatpush3.msra.mxu0 %v2414_v4 }
 0xb03   :  { %2193 = vmatprep.subr.mxu0 %v2346_v0 }
 0xb04   :  { %2194 = vmatpush3.msra.mxu0 %v2427_v7 }
 0xb05   :  { %2195 = vmatprep.subr.mxu0 %v2346_v0 }
 0xb06   :  { %2196 = vmatpush3.msra.mxu0 %v2435_v8 }
 0xb07   :  { %2200 = vmatprep.subr.mxu0 %v2346_v0 }
 0xbae   :  { %v984_v28 = vpop.f32.mrf.mxu0 }
 0xbaf   :  { %v988_v30 = vadd.f32 %v984_v28, %v178_v25 }
 0xbb0   :  { %v2139_v27 = vpop.f32.mrf.mxu0 }
 0xbb1   :  { %v989_v31 = vmul.f32 0.5, %v988_v30 }
 0xbb3   :  { %v990_v34 = vsel %vm2461_vm4, %v988_v30, %v989_v31 }
 0xbb4   :  { %2301 = vtanh.f32 %v990_v34 }
 0xbbf   :  { %v1087_v29 = vpop.f32.mrf.mxu0 }
 0xbc0   :  { %v1088_v36 = vadd.f32 %v2606_v56, %v1087_v29 }
 0xbc1   :  { %v2302_v38 = vpop.eup %2301  ;;  %v2158_v41 = vpop.f32.mrf.mxu0 }
 0xbc2   :  { %v1091_v42 = vmul.f32 0.5, %v1088_v36  ;;  %v992_v45 = vadd.f32 1.0, %v2302_v38 }
 0xbc4   :  { %v1092_v46 = vsel %vm2461_vm4, %v1088_v36, %v1091_v42  ;;  %v993_v47 = vmul.f32 0.5, %v992_v45 }
 0xbc5   :  { %2303 = vtanh.f32 %v1092_v46 }
 0xbc6   :  { %v994_v52 = vsel %vm2461_vm4, %v2302_v38, %v993_v47 }
 0xbc7   :  { %997 = vrot.lane.b32.xlu0 %v994_v52, %s2348_s21  ;;  %v995_v62 = vmul.f32 %v994_v52, %v2729_v11 }
 0xbd2   :  { %v2304_v48 = vpop.eup %2303 }
 0xbd3   :  { %v1094_v55 = vadd.f32 1.0, %v2304_v48 }
 0xbd5   :  { %v1095_v57 = vmul.f32 0.5, %v1094_v55 }
 0xbd7   :  { %v1096_v58 = vsel %vm2461_vm4, %v2304_v48, %v1095_v57 }
 0xbd8   :  { %1099 = vrot.lane.b32.xlu1 %v1096_v58, %s2348_s21  ;;  %v1097_v3 = vmul.f32 %v1096_v58, %v2733_v16 }
 0xc39   :  { %v998_v59 = vpop.permute.xlu0 %997 }
 0xc3a   :  { %v1000_v49 = vmul.f32 %v998_v59, %v994_v52 }
 0xc3c   :  { %1002 = vrot.lane.b32.xlu0 %v1000_v49, %s2349_s22 }
 0xc4a   :  { %v1100_v60 = vpop.permute.xlu1 %1099 }
 0xc4b   :  { %v1102_v61 = vmul.f32 %v1100_v60, %v1096_v58 }
 0xc4d   :  { %1104 = vrot.lane.b32.xlu1 %v1102_v61, %s2349_s22 }
 0xcae   :  { %v1003_v63 = vpop.permute.xlu0 %1002 }
 0xcaf   :  { %v2787_v1 = vadd.f32 %v1003_v63, %v995_v62 }
 0xcb1   :  { %2305 = vtanh.f32 %v2787_v1 }
 0xcbe   :  { %v2306_v50 = vpop.eup %2305 }
 0xcbf   :  { %v1105_v5 = vpop.permute.xlu1 %1104  ;;  %1008 = vrot.lane.b32.xlu0 %v2306_v50, %s2348_s21 }
 0xcc0   :  { %v2792_v6 = vadd.f32 %v1105_v5, %v1097_v3 }
 0xcc2   :  { %2307 = vtanh.f32 %v2792_v6 }
 0xccf   :  { %v2308_v9 = vpop.eup %2307 }
 0xcd0   :  { %1110 = vrot.lane.b32.xlu1 %v2308_v9, %s2348_s21 }
 0xd31   :  { %v1009_v10 = vpop.permute.xlu0 %1008 }
 0xd32   :  { %v1011_v11 = vmul.f32 %v1009_v10, %v994_v52 }
 0xd34   :  { %1116 = vrot.lane.b32.xlu0 %v1011_v11, %s2349_s22 }
 0xd42   :  { %v1111_v13 = vpop.permute.xlu1 %1110 }
 0xd43   :  { %v1113_v14 = vmul.f32 %v1111_v13, %v1096_v58 }
 0xd45   :  { %1216 = vrot.lane.b32.xlu1 %v1113_v14, %s2348_s21 }
 0xda6   :  { %v1117_v15 = vpop.permute.xlu0 %1116 }
 0xda7   :  { %2168 = vmatmul.mubr.msk.f32.vlgmr.msra.gmra.mxu1 %vm205_vm5, %v1117_v15 }
 0xda8   :  { %2171 = vmatpush3.msra.mxu1 %v2483_v32  ;;  %2186 = vmatprep.mubr.msk.f32.mxu1 %vm2347_vm0, %v2346_v0 }
 0xda9   :  { %2172 = vmatprep.subr.mxu1 %v2346_v0 }
 0xdaa   :  { %2173 = vmatpush3.msra.mxu1 %v2489_v33 }
 0xdab   :  { %2174 = vmatprep.subr.mxu1 %v2346_v0 }
 0xdac   :  { %2175 = vmatpush3.msra.mxu1 %v2500_v35 }
 0xdad   :  { %2176 = vmatprep.subr.mxu1 %v2346_v0 }
 0xdae   :  { %2177 = vmatpush3.msra.mxu1 %v2511_v37 }
 0xdaf   :  { %2178 = vmatprep.subr.mxu1 %v2346_v0 }
 0xdb0   :  { %2179 = vmatpush3.msra.mxu1 %v2522_v39 }
 0xdb1   :  { %2180 = vmatprep.subr.mxu1 %v2346_v0 }
 0xdb2   :  { %2181 = vmatpush3.msra.mxu1 %v2530_v40 }
 0xdb3   :  { %2182 = vmatprep.subr.mxu1 %v2346_v0 }
 0xdb4   :  { %2183 = vmatpush3.msra.mxu1 %v2541_v43 }
 0xdb5   :  { %2184 = vmatprep.subr.mxu1 %v2346_v0 }
 0xdb6   :  { %2185 = vmatpush3.msra.mxu1 %v2553_v44 }
 0xdb7   :  { %v1217_v16 = vpop.permute.xlu1 %1216  ;;  %2219 = vmatprep.subr.mxu1 %v2346_v0 }
 0xdb8   :  { %v1219_v18 = vsel %vm205_vm5, %v1117_v15, %v1217_v16 }
 0xdb9   :  { %2187 = vmatmul.mubr.msk.f32.vlgmr.msra.gmra.mxu1 %vm411_vm6, %v1219_v18 }
 0xdba   :  { %2220 = vmatpush3.msra.mxu1 %v2403_v2  ;;  %2227 = vmatprep.mubr.msk.f32.mxu1 %vm2347_vm0, %v2346_v0  ;;  %v183_v2 = vadd.f32 %v2593_v51, %v2458_v12 }
 0xdbb   :  { %2221 = vmatprep.subr.mxu1 %v2346_v0 }
 0xdbc   :  { %2222 = vmatpush3.msra.mxu1 %v2414_v4 }
 0xdbd   :  { %2223 = vmatprep.subr.mxu1 %v2346_v0 }
 0xdbe   :  { %2224 = vmatpush3.msra.mxu1 %v2427_v7 }
 0xdbf   :  { %2225 = vmatprep.subr.mxu1 %v2346_v0 }
 0xdc0   :  { %2226 = vmatpush3.msra.mxu1 %v2435_v8 }
 0xdc1   :  { %2230 = vmatprep.subr.mxu1 %v2346_v0 }
 0xe67   :  { %v1186_v20 = vpop.f32.mrf.mxu1 }
 0xe68   :  { %v1190_v19 = vadd.f32 %v1186_v20, %v183_v2 }
 0xe69   :  { %v2169_v21 = vpop.f32.mrf.mxu1 }
 0xe6a   :  { %v1191_v23 = vmul.f32 0.5, %v1190_v19 }
 0xe6c   :  { %v1192_v4 = vsel %vm2461_vm4, %v1190_v19, %v1191_v23 }
 0xe6d   :  { %2309 = vtanh.f32 %v1192_v4 }
 0xe79   :  { %v1289_v22 = vpop.f32.mrf.mxu1 }
 0xe7a   :  { %v2310_v24 = vpop.eup %2309  ;;  %v1290_v7 = vadd.f32 %v2606_v56, %v1289_v22 }
 0xe7b   :  { %v2188_v26 = vpop.f32.mrf.mxu1  ;;  %v1194_v25 = vadd.f32 1.0, %v2310_v24 }
 0xe7c   :  { %v1293_v8 = vmul.f32 0.5, %v1290_v7 }
 0xe7d   :  { %v1195_v28 = vmul.f32 0.5, %v1194_v25 }
 0xe7e   :  { %v1294_v30 = vsel %vm2461_vm4, %v1290_v7, %v1293_v8 }
 0xe7f   :  { %2311 = vtanh.f32 %v1294_v30  ;;  %v1196_v51 = vsel %vm2461_vm4, %v2310_v24, %v1195_v28 }
 0xe80   :  { %1199 = vrot.lane.b32.xlu0 %v1196_v51, %s2348_s21  ;;  %v1197_v45 = vmul.f32 %v1196_v51, %v2787_v1 }
 0xe8c   :  { %v2312_v27 = vpop.eup %2311 }
 0xe8d   :  { %v1296_v31 = vadd.f32 1.0, %v2312_v27 }
 0xe8f   :  { %v1297_v34 = vmul.f32 0.5, %v1296_v31 }
 0xe91   :  { %v1298_v29 = vsel %vm2461_vm4, %v2312_v27, %v1297_v34 }
 0xe92   :  { %1301 = vrot.lane.b32.xlu1 %v1298_v29, %s2348_s21  ;;  %v1299_v48 = vmul.f32 %v1298_v29, %v2792_v6 }
 0xef2   :  { %v1200_v36 = vpop.permute.xlu0 %1199 }
 0xef3   :  { %v1202_v38 = vmul.f32 %v1200_v36, %v1196_v51  ;;  %v2342_v36 = vld [vmem:[%s2997_s4 + $0x30] sm:$0xff] }
 0xef5   :  { %1204 = vrot.lane.b32.xlu0 %v1202_v38, %s2349_s22  ;;  %v2343_v38 = vld [vmem:[%s2997_s4 + $0x28] sm:$0xff] }
 0xf04   :  { %v1302_v41 = vpop.permute.xlu1 %1301 }
 0xf05   :  { %v1304_v42 = vmul.f32 %v1302_v41, %v1298_v29  ;;  %v2344_v41 = vld [vmem:[%s2997_s4 + $0x20] sm:$0xff] }
 0xf07   :  { %1306 = vrot.lane.b32.xlu1 %v1304_v42, %s2349_s22 }
 0xf67   :  { %v1205_v46 = vpop.permute.xlu0 %1204 }
 0xf68   :  { %v2845_v47 = vadd.f32 %v1205_v46, %v1197_v45 }
 0xf6a   :  { %2313 = vtanh.f32 %v2845_v47 }
 0xf77   :  { %v2314_v52 = vpop.eup %2313 }
 0xf78   :  { %1210 = vrot.lane.b32.xlu0 %v2314_v52, %s2348_s21 }
 0xf79   :  { %v1307_v55 = vpop.permute.xlu1 %1306 }
 0xf7a   :  { %v2850_v57 = vadd.f32 %v1307_v55, %v1299_v48 }
 0xf7c   :  { %2315 = vtanh.f32 %v2850_v57 }
 0xf89   :  { %v2316_v58 = vpop.eup %2315 }
 0xf8a   :  { %1312 = vrot.lane.b32.xlu1 %v2316_v58, %s2348_s21 }
 0xfea   :  { %v1211_v59 = vpop.permute.xlu0 %1210 }
 0xfeb   :  { %v1213_v49 = vmul.f32 %v1211_v59, %v1196_v51 }
 0xfed   :  { %1318 = vrot.lane.b32.xlu0 %v1213_v49, %s2349_s22 }
 0xffc   :  { %v1313_v60 = vpop.permute.xlu1 %1312 }
 0xffd   :  { %v1315_v61 = vmul.f32 %v1313_v60, %v1298_v29  ;;  %v2341_v29 = vld [vmem:[%s2997_s4 + $0x38] sm:$0xff] }
 0xfff   :  { %1418 = vrot.lane.b32.xlu1 %v1315_v61, %s2348_s21 }
0x105f   :  { %v1319_v62 = vpop.permute.xlu0 %1318 }
0x1060   :  { %2198 = vmatmul.mubr.msk.f32.vlgmr.msra.gmra.mxu0 %vm205_vm5, %v1319_v62 }
0x1061   :  { %2201 = vmatpush3.msra.mxu0 %v2483_v32  ;;  %2216 = vmatprep.mubr.msk.f32.mxu0 %vm2347_vm0, %v2346_v0 }
0x1062   :  { %2202 = vmatprep.subr.mxu0 %v2346_v0 }
0x1063   :  { %2203 = vmatpush3.msra.mxu0 %v2489_v33 }
0x1064   :  { %2204 = vmatprep.subr.mxu0 %v2346_v0 }
0x1065   :  { %2205 = vmatpush3.msra.mxu0 %v2500_v35 }
0x1066   :  { %2206 = vmatprep.subr.mxu0 %v2346_v0 }
0x1067   :  { %2207 = vmatpush3.msra.mxu0 %v2511_v37 }
0x1068   :  { %2208 = vmatprep.subr.mxu0 %v2346_v0 }
0x1069   :  { %2209 = vmatpush3.msra.mxu0 %v2522_v39 }
0x106a   :  { %2210 = vmatprep.subr.mxu0 %v2346_v0 }
0x106b   :  { %2211 = vmatpush3.msra.mxu0 %v2530_v40 }
0x106c   :  { %2212 = vmatprep.subr.mxu0 %v2346_v0 }
0x106d   :  { %2213 = vmatpush3.msra.mxu0 %v2541_v43 }
0x106e   :  { %2214 = vmatprep.subr.mxu0 %v2346_v0 }
0x106f   :  { %2215 = vmatpush3.msra.mxu0 %v2553_v44 }
0x1070   :  { %2249 = vmatprep.subr.mxu0 %v2346_v0 }
0x1071   :  { %v1419_v63 = vpop.permute.xlu1 %1418 }
0x1072   :  { %v1421_v1 = vsel %vm205_vm5, %v1319_v62, %v1419_v63 }
0x1073   :  { %2217 = vmatmul.mubr.msk.f32.vlgmr.msra.gmra.mxu0 %vm411_vm6, %v1421_v1 }
0x1074   :  { %2250 = vmatpush3.msra.mxu0 %v2483_v32  ;;  %2265 = vmatprep.mubr.msk.f32.mxu0 %vm2347_vm0, %v2346_v0  ;;  %v188_v32 = vadd.f32 %v2458_v12, %v2599_v54 }
0x1075   :  { %2251 = vmatprep.subr.mxu0 %v2346_v0 }
0x1076   :  { %2252 = vmatpush3.msra.mxu0 %v2489_v33 }
0x1077   :  { %2253 = vmatprep.subr.mxu0 %v2346_v0 }
0x1078   :  { %2254 = vmatpush3.msra.mxu0 %v2500_v35 }
0x1079   :  { %2255 = vmatprep.subr.mxu0 %v2346_v0 }
0x107a   :  { %2256 = vmatpush3.msra.mxu0 %v2511_v37 }
0x107b   :  { %2257 = vmatprep.subr.mxu0 %v2346_v0 }
0x107c   :  { %2258 = vmatpush3.msra.mxu0 %v2522_v39 }
0x107d   :  { %2259 = vmatprep.subr.mxu0 %v2346_v0 }
0x107e   :  { %2260 = vmatpush3.msra.mxu0 %v2530_v40 }
0x107f   :  { %2261 = vmatprep.subr.mxu0 %v2346_v0 }
0x1080   :  { %2262 = vmatpush3.msra.mxu0 %v2541_v43 }
0x1081   :  { %2263 = vmatprep.subr.mxu0 %v2346_v0 }
0x1082   :  { %2264 = vmatpush3.msra.mxu0 %v2553_v44 }
0x1120   :  { %v1388_v33 = vpop.f32.mrf.mxu0 }
0x1121   :  { %v1392_v35 = vadd.f32 %v1388_v33, %v188_v32 }
0x1122   :  { %v2199_v37 = vpop.f32.mrf.mxu0 }
0x1123   :  { %v1393_v50 = vmul.f32 0.5, %v1392_v35 }
0x1125   :  { %v1394_v3 = vsel %vm2461_vm4, %v1392_v35, %v1393_v50 }
0x1126   :  { %2317 = vtanh.f32 %v1394_v3 }
0x1133   :  { %v2318_v5 = vpop.eup %2317  ;;  %v1491_v6 = vpop.f32.mrf.mxu0 }
0x1134   :  { %v1492_v9 = vadd.f32 %v2606_v56, %v1491_v6  ;;  %v1396_v10 = vadd.f32 1.0, %v2318_v5 }
0x1135   :  { %v2218_v11 = vpop.f32.mrf.mxu0 }
0x1136   :  { %v1495_v13 = vmul.f32 0.5, %v1492_v9  ;;  %v1397_v14 = vmul.f32 0.5, %v1396_v10 }
0x1138   :  { %v1496_v15 = vsel %vm2461_vm4, %v1492_v9, %v1495_v13  ;;  %v1398_v12 = vsel %vm2461_vm4, %v2318_v5, %v1397_v14 }
0x1139   :  { %2319 = vtanh.f32 %v1496_v15  ;;  %1401 = vrot.lane.b32.xlu0 %v1398_v12, %s2348_s21  ;;  %v1399_v4 = vmul.f32 %v1398_v12, %v2845_v47 }
0x1146   :  { %v2320_v54 = vpop.eup %2319 }
0x1147   :  { %v1498_v16 = vadd.f32 1.0, %v2320_v54 }
0x1149   :  { %v1499_v18 = vmul.f32 0.5, %v1498_v16 }
0x114b   :  { %v1500_v2 = vsel %vm2461_vm4, %v2320_v54, %v1499_v18 }
0x114c   :  { %1503 = vrot.lane.b32.xlu1 %v1500_v2, %s2348_s21  ;;  %v1501_v26 = vmul.f32 %v1500_v2, %v2850_v57 }
0x11ab   :  { %v1402_v20 = vpop.permute.xlu0 %1401 }
0x11ac   :  { %v1404_v19 = vmul.f32 %v1402_v20, %v1398_v12 }
0x11ae   :  { %1406 = vrot.lane.b32.xlu0 %v1404_v19, %s2349_s22 }
0x11be   :  { %v1504_v21 = vpop.permute.xlu1 %1503 }
0x11bf   :  { %v1506_v23 = vmul.f32 %v1504_v21, %v1500_v2 }
0x11c1   :  { %1508 = vrot.lane.b32.xlu1 %v1506_v23, %s2349_s22 }
0x1220   :  { %v1407_v22 = vpop.permute.xlu0 %1406 }
0x1221   :  { %v2910_v24 = vadd.f32 %v1407_v22, %v1399_v4 }
0x1223   :  { %2321 = vtanh.f32 %v2910_v24 }
0x1230   :  { %v2322_v7 = vpop.eup %2321 }
0x1231   :  { %1412 = vrot.lane.b32.xlu0 %v2322_v7, %s2348_s21 }
0x1233   :  { %v1509_v25 = vpop.permute.xlu1 %1508 }
0x1234   :  { %v2915_v8 = vadd.f32 %v1509_v25, %v1501_v26 }
0x1236   :  { %2323 = vtanh.f32 %v2915_v8 }
0x1243   :  { %v2324_v28 = vpop.eup %2323 }
0x1244   :  { %1514 = vrot.lane.b32.xlu1 %v2324_v28, %s2348_s21 }
0x12a3   :  { %v1413_v30 = vpop.permute.xlu0 %1412 }
0x12a4   :  { %v1415_v51 = vmul.f32 %v1413_v30, %v1398_v12 }
0x12a6   :  { %1520 = vrot.lane.b32.xlu0 %v1415_v51, %s2349_s22 }
0x12b6   :  { %v1515_v27 = vpop.permute.xlu1 %1514 }
0x12b7   :  { %v1517_v31 = vmul.f32 %v1515_v27, %v1500_v2 }
0x12b9   :  { %1620 = vrot.lane.b32.xlu1 %v1517_v31, %s2348_s21 }
0x1318   :  { %v1521_v34 = vpop.permute.xlu0 %1520 }
0x1319   :  { %2228 = vmatmul.mubr.msk.f32.vlgmr.msra.gmra.mxu1 %vm205_vm5, %v1521_v34 }
0x131a   :  { %2231 = vmatpush3.msra.mxu1 %v2341_v29  ;;  %2246 = vmatprep.mubr.msk.f32.mxu1 %vm2347_vm0, %v2346_v0 }
0x131b   :  { %2232 = vmatprep.subr.mxu1 %v2346_v0 }
0x131c   :  { %2233 = vmatpush3.msra.mxu1 %v2342_v36 }
0x131d   :  { %2234 = vmatprep.subr.mxu1 %v2346_v0 }
0x131e   :  { %2235 = vmatpush3.msra.mxu1 %v2343_v38 }
0x131f   :  { %2236 = vmatprep.subr.mxu1 %v2346_v0 }
0x1320   :  { %2237 = vmatpush3.msra.mxu1 %v2344_v41 }
0x1321   :  { %2238 = vmatprep.subr.mxu1 %v2346_v0 }
0x1322   :  { %2239 = vmatpush3.msra.mxu1 %v2522_v39  ;;  %v2345_v39 = vld [vmem:[%s2996_s3] ss:$0 sm:$0xff] }
0x1323   :  { %2240 = vmatprep.subr.mxu1 %v2346_v0  ;;  %v193_v46 = vadd.f32 %v2345_v39, %v2597_v53 }
0x1324   :  { %2241 = vmatpush3.msra.mxu1 %v2530_v40 }
0x1325   :  { %2242 = vmatprep.subr.mxu1 %v2346_v0 }
0x1326   :  { %2243 = vmatpush3.msra.mxu1 %v2541_v43 }
0x1327   :  { %2244 = vmatprep.subr.mxu1 %v2346_v0 }
0x1328   :  { %2245 = vmatpush3.msra.mxu1 %v2553_v44 }
0x132b   :  { %v1621_v42 = vpop.permute.xlu1 %1620 }
0x132c   :  { %v1623_v45 = vsel %vm205_vm5, %v1521_v34, %v1621_v42  ;;  %v1888_v42 = vld [vmem:[#allocation3] ss:$0 sm:$0xff] }
0x132d   :  { %2247 = vmatmul.mubr.msk.f32.vlgmr.msra.gmra.mxu1 %vm411_vm6, %v1623_v45 }
0x13d9   :  { %v1590_v40 = vpop.f32.mrf.mxu1 }
0x13da   :  { %v1594_v47 = vadd.f32 %v1590_v40, %v193_v46 }
0x13db   :  { %v2229_v52 = vpop.f32.mrf.mxu1 }
0x13dc   :  { %v1595_v48 = vmul.f32 0.5, %v1594_v47 }
0x13de   :  { %v1596_v0 = vsel %vm2461_vm4, %v1594_v47, %v1595_v48 }
0x13df   :  { %2325 = vtanh.f32 %v1596_v0 }
0x13ec   :  { %v2326_v43 = vpop.eup %2325 }
0x13ed   :  { %v1693_v44 = vpop.f32.mrf.mxu1  ;;  %v1598_v55 = vadd.f32 1.0, %v2326_v43 }
0x13ee   :  { %v1694_v57 = vadd.f32 %v2606_v56, %v1693_v44 }
0x13ef   :  { %v2248_v58 = vpop.f32.mrf.mxu1  ;;  %v1599_v59 = vmul.f32 0.5, %v1598_v55 }
0x13f0   :  { %v1697_v49 = vmul.f32 0.5, %v1694_v57 }
0x13f1   :  { %v1600_v60 = vsel %vm2461_vm4, %v2326_v43, %v1599_v59 }
0x13f2   :  { %v1698_v53 = vsel %vm2461_vm4, %v1694_v57, %v1697_v49  ;;  %1603 = vrot.lane.b32.xlu0 %v1600_v60, %s2348_s21  ;;  %v1601_v50 = vmul.f32 %v1600_v60, %v2910_v24 }
0x13f3   :  { %2327 = vtanh.f32 %v1698_v53 }
0x1400   :  { %v2328_v61 = vpop.eup %2327 }
0x1401   :  { %v1700_v62 = vadd.f32 1.0, %v2328_v61 }
0x1403   :  { %v1701_v63 = vmul.f32 0.5, %v1700_v62 }
0x1405   :  { %v1702_v1 = vsel %vm2461_vm4, %v2328_v61, %v1701_v63 }
0x1406   :  { %1705 = vrot.lane.b32.xlu1 %v1702_v1, %s2348_s21  ;;  %v1703_v9 = vmul.f32 %v1702_v1, %v2915_v8 }
0x1464   :  { %v1604_v32 = vpop.permute.xlu0 %1603 }
0x1465   :  { %v1606_v33 = vmul.f32 %v1604_v32, %v1600_v60 }
0x1467   :  { %1608 = vrot.lane.b32.xlu0 %v1606_v33, %s2349_s22 }
0x1478   :  { %v1706_v35 = vpop.permute.xlu1 %1705 }
0x1479   :  { %v1708_v37 = vmul.f32 %v1706_v35, %v1702_v1 }
0x147b   :  { %1710 = vrot.lane.b32.xlu1 %v1708_v37, %s2349_s22 }
0x14d9   :  { %v1609_v3 = vpop.permute.xlu0 %1608 }
0x14da   :  { %v1611_v5 = vadd.f32 %v1609_v3, %v1601_v50 }
0x14dc   :  { %2329 = vtanh.f32 %v1611_v5 }
0x14e9   :  { %v2330_v6 = vpop.eup %2329 }
0x14ea   :  { %1614 = vrot.lane.b32.xlu0 %v2330_v6, %s2348_s21 }
0x14ed   :  { %v1711_v10 = vpop.permute.xlu1 %1710 }
0x14ee   :  { %v1713_v11 = vadd.f32 %v1711_v10, %v1703_v9 }
0x14f0   :  { %2331 = vtanh.f32 %v1713_v11 }
0x14fd   :  { %v2332_v13 = vpop.eup %2331 }
0x14fe   :  { %1716 = vrot.lane.b32.xlu1 %v2332_v13, %s2348_s21 }
0x155c   :  { %v1615_v14 = vpop.permute.xlu0 %1614 }
0x155d   :  { %v1617_v15 = vmul.f32 %v1615_v14, %v1600_v60 }
0x155f   :  { %1721 = vrot.lane.b32.xlu0 %v1617_v15, %s2349_s22 }
0x1570   :  { %v1717_v12 = vpop.permute.xlu1 %1716 }
0x1571   :  { %v1719_v54 = vmul.f32 %v1717_v12, %v1702_v1 }
0x1573   :  { %1725 = vrot.lane.b32.xlu1 %v1719_v54, %s2348_s21 }
0x15d1   :  { %v1722_v16 = vpop.permute.xlu0 %1721 }
0x15e5   :  { %v1726_v18 = vpop.permute.xlu1 %1725 }
0x15e6   :  { %v1728_v2 = vsel %vm205_vm5, %v1722_v16, %v1726_v18 }
0x15e7   :  { %2266 = vmatmul.mubr.msk.f32.vlgmr.msra.gmra.mxu0 %vm411_vm6, %v1728_v2 }
0x16a7   :  { %v1798_v20 = vpop.f32.mrf.mxu0 }
0x16a8   :  { %v1799_v19 = vadd.f32 %v2606_v56, %v1798_v20  ;;  %v1887_v56 = vld [vmem:[%s2999_s6] ss:$0 sm:$0xff] }
0x16a9   :  { %v2267_v21 = vpop.f32.mrf.mxu0 }
0x16aa   :  { %v1802_v23 = vmul.f32 0.5, %v1799_v19 }
0x16ac   :  { %v1803_v4 = vsel %vm2461_vm4, %v1799_v19, %v1802_v23 }
0x16ad   :  { %2333 = vtanh.f32 %v1803_v4 }
0x16ba   :  { %v2334_v22 = vpop.eup %2333 }
0x16bb   :  { %v1805_v24 = vadd.f32 1.0, %v2334_v22 }
0x16bd   :  { %v1806_v7 = vmul.f32 0.5, %v1805_v24 }
0x16bf   :  { %v1807_v26 = vsel %vm2461_vm4, %v2334_v22, %v1806_v7 }
0x16c0   :  { %1810 = vrot.lane.b32.xlu0 %v1807_v26, %s2348_s21  ;;  %v1808_v28 = vmul.f32 %v1807_v26, %v1713_v11 }
0x1732   :  { %v1811_v25 = vpop.permute.xlu0 %1810 }
0x1733   :  { %v1813_v8 = vmul.f32 %v1811_v25, %v1807_v26 }
0x1735   :  { %1815 = vrot.lane.b32.xlu1 %v1813_v8, %s2349_s22 }
0x1739   :  { %1831 = vrot.lane.b32.xlu1 %v1887_v56, %s2350_s16 }
0x17a7   :  { %v1816_v30 = vpop.permute.xlu1 %1815 }
0x17a8   :  { %v1818_v51 = vadd.f32 %v1816_v30, %v1808_v28 }
0x17aa   :  { %2335 = vtanh.f32 %v1818_v51 }
0x17ab   :  { %v1832_v34 = vpop.permute.xlu1 %1831 }
0x17b7   :  { %v2336_v27 = vpop.eup %2335 }
0x17b8   :  { %1821 = vrot.lane.b32.xlu0 %v2336_v27, %s2348_s21 }
0x182a   :  { %v1822_v31 = vpop.permute.xlu0 %1821 }
0x182b   :  { %v1824_v29 = vmul.f32 %v1822_v31, %v1807_v26 }
0x182d   :  { %v1834_v36 = vmul.f32 %v1832_v34, %v1824_v29 }
0x182f   :  { %1836 = vrot.lane.b32.xlu0 %v1834_v36, %s2349_s22 }
0x18a1   :  { %v1837_v38 = vpop.permute.xlu0 %1836 }
0x18a2   :  { %v1839_v41 = vsel %vm205_vm5, %v1837_v38, 0.0 }
0x18a3   :  { %1840 = vadd.xlane.f32.xlu1 %v1839_v41 }
0x192c   :  { %v1841_v45 = vpop.xlane.xlu1 %1840 }
0x192d   :  { %v1849_v39 = vadd.f32 %v1888_v42, %v1841_v45 }
0x192f   :  { %v1889_v46 = vmul.f32 -1.442695, %v1849_v39 }
0x1931   :  { %2337 = vpow2.f32 %v1889_v46 }
0x193e   :  { %v2338_v40 = vpop.eup %2337 }
0x193f   :  { %v1853_v47 = vadd.f32 1.0, %v2338_v40 }
0x1941   :  { %2339 = vrcp.f32 %v1853_v47 }
0x194e   :  { %v2340_v52 = vpop.eup %2339 }
0x194f   :  { %1857 = vst.msk [vmem:[%s3001_s8] sm:$0xff] %vm1856_vm7, %v2340_v52 }

</bundles_post_ra>
